<compile_context>
chip_gen: v7x
topology: tpu7x:2x2x1
jax: 0.10.0
libtpu: 0.0.40
codegen_flags: <defaults>
</compile_context>

<pallas_src>
import functools

import jax
import jax.numpy as jnp
from jax import lax
from jax.experimental import pallas as pl
from jax.experimental.pallas import tpu as pltpu


def _round_up(n, m):
    return ((n + m - 1) // m) * m


def _largest_tile(n, target, granule=16):
    """Largest divisor of n that is <= target and a multiple of `granule` (else n)."""
    if n <= target:
        return n
    d = (target // granule) * granule
    while d >= granule:
        if n % d == 0:
            return d
        d -= granule
    return n


# ----------------------------------------------------------------------------
# Kernel 1: hoisted input projection  gates_x = x @ w_ih + (b_ih + b_hh)
# One large, well-shaped MXU matmul over all T*B rows (grid over row tiles).
# ----------------------------------------------------------------------------
def _input_proj_kernel(x_ref, w_ref, b_ref, o_ref):
    o_ref[...] = (jnp.dot(x_ref[...], w_ref[...],
                          preferred_element_type=jnp.float32) + b_ref[...])


def input_projection(x_ne, w_ih, bias):
    """x_ne: (N, E) bf16, w_ih: (E, 4H) bf16, bias: (1, 4H) f32 -> (N, 4H) f32."""
    N, E = x_ne.shape
    G = w_ih.shape[1]
    tm = _largest_tile(N, 256)
    grid_spec = pltpu.PrefetchScalarGridSpec(
        num_scalar_prefetch=0,
        grid=(N // tm,),
        in_specs=[
            pl.BlockSpec((tm, E), lambda i: (i, 0)),
            pl.BlockSpec((E, G), lambda i: (0, 0)),   # resident weight
            pl.BlockSpec((1, G), lambda i: (0, 0)),   # resident bias
        ],
        out_specs=pl.BlockSpec((tm, G), lambda i: (i, 0)),
    )
    return pl.pallas_call(
        _input_proj_kernel,
        out_shape=jax.ShapeDtypeStruct((N, G), jnp.float32),
        grid_spec=grid_spec,
        compiler_params=pltpu.CompilerParams(dimension_semantics=("parallel",)),
    )(x_ne, w_ih, bias)


# ----------------------------------------------------------------------------
# Kernel 2: LSTM recurrence. Grid over batch tiles only ("parallel").
# The T loop runs in-kernel (no per-step grid overhead); state lives in the
# final-state output refs (no VMEM scratch, no redundant per-step stores).
# ----------------------------------------------------------------------------
def _lstm_recurrence_kernel(gx_ref, whh_ref, out_ref, h_ref, c_ref, *, unroll):
    T = gx_ref.shape[0]
    H = whh_ref.shape[0]
    w_hh = whh_ref[...]                                  # (H, 4H) bf16, resident

    h_ref[...] = jnp.zeros(h_ref.shape, h_ref.dtype)     # zero initial state
    c_ref[...] = jnp.zeros(c_ref.shape, c_ref.dtype)

    def step(t, carry):
        h_prev = h_ref[...]                              # (tb, H) f32
        c_prev = c_ref[...]
        gates = gx_ref[t] + jnp.dot(h_prev.astype(w_hh.dtype), w_hh,
                                    preferred_element_type=jnp.float32)
        i_g = jax.nn.sigmoid(gates[:, 0 * H:1 * H])
        f_g = jax.nn.sigmoid(gates[:, 1 * H:2 * H])
        g_g = jnp.tanh(gates[:, 2 * H:3 * H])
        o_g = jax.nn.sigmoid(gates[:, 3 * H:4 * H])
        c_new = f_g * c_prev + i_g * g_g
        h_new = o_g * jnp.tanh(c_new)
        c_ref[...] = c_new
        h_ref[...] = h_new
        out_ref[t] = h_new.astype(out_ref.dtype)         # bf16 sequence output
        return carry

    lax.fori_loop(0, T, step, None, unroll=unroll)


def lstm_recurrence(gates_x, w_hh):
    """gates_x: (T, Bp, 4H) f32, w_hh: (H, 4H) bf16.

    Returns (out (T, Bp, H) bf16, h_n (Bp, H) f32, c_n (Bp, H) f32)."""
    T, Bp, G = gates_x.shape
    H = w_hh.shape[0]
    tb = _largest_tile(Bp, 128)          # >1 batch tile => both TCs busy on v7x
    kern = functools.partial(_lstm_recurrence_kernel, unroll=(T <= 64))
    grid_spec = pltpu.PrefetchScalarGridSpec(
        num_scalar_prefetch=0,
        grid=(Bp // tb,),
        in_specs=[
            pl.BlockSpec((T, tb, G), lambda b: (0, b, 0)),   # whole sequence, one batch tile
            pl.BlockSpec((H, G), lambda b: (0, 0)),          # resident recurrent weight
        ],
        out_specs=[
            pl.BlockSpec((T, tb, H), lambda b: (0, b, 0)),   # sequence output
            pl.BlockSpec((tb, H), lambda b: (b, 0)),         # final h (doubles as state)
            pl.BlockSpec((tb, H), lambda b: (b, 0)),         # final c (doubles as state)
        ],
    )
    out_shapes = (
        jax.ShapeDtypeStruct((T, Bp, H), jnp.bfloat16),
        jax.ShapeDtypeStruct((Bp, H), jnp.float32),
        jax.ShapeDtypeStruct((Bp, H), jnp.float32),
    )
    return pl.pallas_call(
        kern,
        out_shape=out_shapes,
        grid_spec=grid_spec,
        compiler_params=pltpu.CompilerParams(dimension_semantics=("parallel",)),
    )(gates_x, w_hh)


# ----------------------------------------------------------------------------
# Kernel 3: tiled linear projection + log_softmax over the vocab dimension.
# Grid over row tiles ("parallel"), lane-dense (tn, V) output blocks.
# ----------------------------------------------------------------------------
def _classifier_kernel(x_ref, w_ref, b_ref, o_ref):
    logits = (jnp.dot(x_ref[...], w_ref[...],
                      preferred_element_type=jnp.float32) + b_ref[...])
    m = jnp.max(logits, axis=-1, keepdims=True)
    z = logits - m
    lse = jnp.log(jnp.sum(jnp.exp(z), axis=-1, keepdims=True))
    o_ref[...] = z - lse


def linear_logsoftmax(x_nh, w_hv, b_v):
    """x_nh: (N, H) bf16, w_hv: (H, V) bf16, b_v: (1, V) f32 -> (N, V) f32 log-probs."""
    N, H = x_nh.shape
    V = w_hv.shape[1]
    tn = _largest_tile(N, 256)
    grid_spec = pltpu.PrefetchScalarGridSpec(
        num_scalar_prefetch=0,
        grid=(N // tn,),
        in_specs=[
            pl.BlockSpec((tn, H), lambda i: (i, 0)),
            pl.BlockSpec((H, V), lambda i: (0, 0)),   # resident classifier weight
            pl.BlockSpec((1, V), lambda i: (0, 0)),   # resident bias
        ],
        out_specs=pl.BlockSpec((tn, V), lambda i: (i, 0)),
    )
    return pl.pallas_call(
        _classifier_kernel,
        out_shape=jax.ShapeDtypeStruct((N, V), jnp.float32),
        grid_spec=grid_spec,
        compiler_params=pltpu.CompilerParams(dimension_semantics=("parallel",)),
    )(x_nh, w_hv, b_v)


# ----------------------------------------------------------------------------
# Full forward (glue: embedding gather, batch padding, small layout plumbing)
# ----------------------------------------------------------------------------
def lstm_model_forward(params, seq_ids):
    """seq_ids: (B, T) int32 token ids. Returns (logprobs (B,T,V), (h, c))."""
    B, T = seq_ids.shape
    H = params["w_hh_bf16"].shape[0]
    V = params["w_lin_bf16"].shape[1]
    E = params["embedding"].shape[1]

    # Pad batch to the sublane granule; transpose the tiny id matrix (not activations)
    # so the gather lands directly in time-major layout.
    Bp = _round_up(B, 8)
    ids_tb = jnp.transpose(seq_ids, (1, 0))                    # (T, B)  -- tiny
    ids_tb = jnp.pad(ids_tb, ((0, 0), (0, Bp - B)))            # (T, Bp)
    emb = jnp.take(params["embedding"], ids_tb, axis=0)        # (T, Bp, E) glue gather
    emb_bf = emb.astype(jnp.bfloat16)

    # Kernel 1: hoisted input projection (+ combined bias), one big matmul.
    gates_x = input_projection(emb_bf.reshape(T * Bp, E),
                               params["w_ih_bf16"], params["b_lstm"])
    gates_x = gates_x.reshape(T, Bp, 4 * H)

    # Kernel 2: sequential recurrence (time loop inside the kernel).
    y_tbh, h_n, c_n = lstm_recurrence(gates_x, params["w_hh_bf16"])

    # Glue: batch-major layout for the classifier (small, H-wide, bf16 tensor).
    y_bth = jnp.transpose(y_tbh, (1, 0, 2))                    # (Bp, T, H)

    # Kernel 3: tiled linear + log_softmax; result reshapes directly to (Bp, T, V).
    logprobs = linear_logsoftmax(y_bth.reshape(Bp * T, H),
                                 params["w_lin_bf16"], params["b_lin"])
    logprobs = logprobs.reshape(Bp, T, V)[:B]

    # match nn.LSTM: (num_layers=1, B, H)
    return logprobs, (h_n[None, :B, :], c_n[None, :B, :])


def init_params(key, vocab_size, emb_dim, hidden_dim):
    ks = jax.random.split(key, 7)
    k = 1.0 / jnp.sqrt(hidden_dim)
    w_ih = jax.random.uniform(ks[1], (emb_dim, 4 * hidden_dim), jnp.float32, -k, k)
    w_hh = jax.random.uniform(ks[2], (hidden_dim, 4 * hidden_dim), jnp.float32, -k, k)
    w_lin = jax.random.uniform(ks[5], (hidden_dim, vocab_size), jnp.float32, -k, k)
    return {
        "embedding": jax.random.normal(ks[0], (vocab_size, emb_dim), jnp.float32),
        # pre-transposed to (in, 4H) for x @ W; PyTorch gate order (i, f, g, o);
        # bf16 copies feed the MXU (f32 accumulation inside the kernels).
        "w_ih_bf16": w_ih.astype(jnp.bfloat16),
        "w_hh_bf16": w_hh.astype(jnp.bfloat16),
        "w_lin_bf16": w_lin.astype(jnp.bfloat16),
        # combined b_ih + b_hh, folded into the hoisted input projection
        "b_lstm": (jax.random.uniform(ks[3], (1, 4 * hidden_dim), jnp.float32, -k, k)
                   + jax.random.uniform(ks[4], (1, 4 * hidden_dim), jnp.float32, -k, k)),
        "b_lin": jax.random.uniform(ks[6], (1, vocab_size), jnp.float32, -k, k),
    }


if __name__ == "__main__":
    VOCAB, EMB, HID = 32, 16, 32
    B, T = 2, 8

    key = jax.random.PRNGKey(0)
    pkey, skey = jax.random.split(key)
    params = init_params(pkey, VOCAB, EMB, HID)
    seq = jax.random.randint(skey, (B, T), 0, VOCAB, dtype=jnp.int32)

    logprobs, (h, c) = jax.jit(lstm_model_forward)(params, seq)
    jax.block_until_ready((logprobs, h, c))

    assert logprobs.shape == (B, T, VOCAB)
    assert h.shape == (1, B, HID) and c.shape == (1, B, HID)
    # log_softmax sanity: rows sum to 1 in prob space
    assert jnp.allclose(jnp.sum(jnp.exp(logprobs), axis=-1), 1.0, atol=1e-4)

    print("KERNEL_OK")
</pallas_src>

<mosaic_0001>
module attributes {stable_mosaic.version = 11 : i64} {
  func.func @_input_proj_kernel(%arg0: i32, %arg1: memref<64x16xbf16, #tpu.memory_space<vmem>>, %arg2: memref<16x128xbf16, #tpu.memory_space<vmem>>, %arg3: memref<1x128xf32, #tpu.memory_space<vmem>>, %arg4: memref<64x128xf32, #tpu.memory_space<vmem>>) attributes {dimension_semantics = [#tpu.dimension_semantics<parallel>], iteration_bounds = array<i64: 1>, scalar_prefetch = 0 : i64, scratch_operands = 0 : i64, tpu.core_type = #tpu.core_type<tc>, window_params = [{transform_indices = @transform_0, window_bounds = array<i64: 64, 16>}, {pipeline_mode = #tpu.pipeline_mode<synchronous>, transform_indices = @transform_1, window_bounds = array<i64: 16, 128>}, {pipeline_mode = #tpu.pipeline_mode<synchronous>, transform_indices = @transform_2, window_bounds = array<i64: 1, 128>}, {transform_indices = @transform_3, window_bounds = array<i64: 64, 128>}]} {
    %c0 = arith.constant 0 : index
    %c0_0 = arith.constant 0 : index
    %0 = vector.load %arg1[%c0, %c0_0] : memref<64x16xbf16, #tpu.memory_space<vmem>>, vector<64x16xbf16>
    %c0_1 = arith.constant 0 : index
    %c0_2 = arith.constant 0 : index
    %1 = vector.load %arg2[%c0_1, %c0_2] : memref<16x128xbf16, #tpu.memory_space<vmem>>, vector<16x128xbf16>
    %cst = arith.constant dense<0.000000e+00> : vector<64x128xf32>
    %2 = tpu.matmul %0, %1, %cst {dimension_numbers = #tpu.dot_dimension_numbers<[1], [0], [0], [1], [0, 0, 1, 1], [], []>} : vector<64x16xbf16>, vector<16x128xbf16>, vector<64x128xf32> -> vector<64x128xf32>
    %c0_3 = arith.constant 0 : index
    %c0_4 = arith.constant 0 : index
    %3 = vector.load %arg3[%c0_3, %c0_4] : memref<1x128xf32, #tpu.memory_space<vmem>>, vector<1x128xf32>
    %4 = vector.broadcast %3 : vector<1x128xf32> to vector<64x128xf32>
    %5 = arith.addf %2, %4 : vector<64x128xf32>
    %c0_5 = arith.constant 0 : index
    %c0_6 = arith.constant 0 : index
    %6 = vector.load %arg4[%c0_5, %c0_6] : memref<64x128xf32, #tpu.memory_space<vmem>>, vector<64x128xf32>
    tpu.vector_store %arg4[%c0_5, %c0_6], %5 {strides = array<i32>} : memref<64x128xf32, #tpu.memory_space<vmem>>, vector<64x128xf32>,
    return
  }
  func.func @transform_0(%arg0: i32) -> (i32, i32) {
    %c0_i32 = arith.constant 0 : i32
    %c0_i32_0 = arith.constant 0 : i32
    return %arg0, %c0_i32 : i32, i32
  }
  func.func @transform_1(%arg0: i32) -> (i32, i32) {
    %c0_i32 = arith.constant 0 : i32
    %c0_i32_0 = arith.constant 0 : i32
    %c0_i32_1 = arith.constant 0 : i32
    return %c0_i32, %c0_i32_0 : i32, i32
  }
  func.func @transform_2(%arg0: i32) -> (i32, i32) {
    %c0_i32 = arith.constant 0 : i32
    %c0_i32_0 = arith.constant 0 : i32
    %c0_i32_1 = arith.constant 0 : i32
    return %c0_i32, %c0_i32_0 : i32, i32
  }
  func.func @transform_3(%arg0: i32) -> (i32, i32) {
    %c0_i32 = arith.constant 0 : i32
    %c0_i32_0 = arith.constant 0 : i32
    return %arg0, %c0_i32 : i32, i32
  }
}

module attributes {stable_mosaic.version = 11 : i64} {
  func.func @_classifier_kernel(%arg0: i32, %arg1: memref<64x32xbf16, #tpu.memory_space<vmem>>, %arg2: memref<32x32xbf16, #tpu.memory_space<vmem>>, %arg3: memref<1x32xf32, #tpu.memory_space<vmem>>, %arg4: memref<64x32xf32, #tpu.memory_space<vmem>>) attributes {dimension_semantics = [#tpu.dimension_semantics<parallel>], iteration_bounds = array<i64: 1>, scalar_prefetch = 0 : i64, scratch_operands = 0 : i64, tpu.core_type = #tpu.core_type<tc>, window_params = [{transform_indices = @transform_0, window_bounds = array<i64: 64, 32>}, {pipeline_mode = #tpu.pipeline_mode<synchronous>, transform_indices = @transform_1, window_bounds = array<i64: 32, 32>}, {pipeline_mode = #tpu.pipeline_mode<synchronous>, transform_indices = @transform_2, window_bounds = array<i64: 1, 32>}, {transform_indices = @transform_3, window_bounds = array<i64: 64, 32>}]} {
    %c0 = arith.constant 0 : index
    %c0_0 = arith.constant 0 : index
    %0 = vector.load %arg1[%c0, %c0_0] : memref<64x32xbf16, #tpu.memory_space<vmem>>, vector<64x32xbf16>
    %c0_1 = arith.constant 0 : index
    %c0_2 = arith.constant 0 : index
    %1 = vector.load %arg2[%c0_1, %c0_2] : memref<32x32xbf16, #tpu.memory_space<vmem>>, vector<32x32xbf16>
    %cst = arith.constant dense<0.000000e+00> : vector<64x32xf32>
    %2 = tpu.matmul %0, %1, %cst {dimension_numbers = #tpu.dot_dimension_numbers<[1], [0], [0], [1], [0, 0, 1, 1], [], []>} : vector<64x32xbf16>, vector<32x32xbf16>, vector<64x32xf32> -> vector<64x32xf32>
    %c0_3 = arith.constant 0 : index
    %c0_4 = arith.constant 0 : index
    %3 = vector.load %arg3[%c0_3, %c0_4] : memref<1x32xf32, #tpu.memory_space<vmem>>, vector<1x32xf32>
    %4 = vector.broadcast %3 : vector<1x32xf32> to vector<64x32xf32>
    %5 = arith.addf %2, %4 : vector<64x32xf32>
    %cst_5 = arith.constant dense<0xFF800000> : vector<64xf32>
    %6 = vector.multi_reduction <maximumf>, %5, %cst_5 [1] : vector<64x32xf32> to vector<64xf32>
    %7 = vector.shape_cast %6 : vector<64xf32> to vector<64x1xf32>
    %8 = vector.broadcast %7 : vector<64x1xf32> to vector<64x32xf32>
    %9 = arith.subf %5, %8 : vector<64x32xf32>
    %10 = math.exp %9 : vector<64x32xf32>
    %cst_6 = arith.constant dense<0.000000e+00> : vector<64xf32>
    %11 = vector.multi_reduction <add>, %10, %cst_6 [1] : vector<64x32xf32> to vector<64xf32>
    %12 = vector.shape_cast %11 : vector<64xf32> to vector<64x1xf32>
    %13 = math.log %12 : vector<64x1xf32>
    %14 = vector.broadcast %13 : vector<64x1xf32> to vector<64x32xf32>
    %15 = arith.subf %9, %14 : vector<64x32xf32>
    %c0_7 = arith.constant 0 : index
    %c0_8 = arith.constant 0 : index
    %16 = vector.load %arg4[%c0_7, %c0_8] : memref<64x32xf32, #tpu.memory_space<vmem>>, vector<64x32xf32>
    tpu.vector_store %arg4[%c0_7, %c0_8], %15 {strides = array<i32>} : memref<64x32xf32, #tpu.memory_space<vmem>>, vector<64x32xf32>,
    return
  }
  func.func @transform_0(%arg0: i32) -> (i32, i32) {
    %c0_i32 = arith.constant 0 : i32
    %c0_i32_0 = arith.constant 0 : i32
    return %arg0, %c0_i32 : i32, i32
  }
  func.func @transform_1(%arg0: i32) -> (i32, i32) {
    %c0_i32 = arith.constant 0 : i32
    %c0_i32_0 = arith.constant 0 : i32
    %c0_i32_1 = arith.constant 0 : i32
    return %c0_i32, %c0_i32_0 : i32, i32
  }
  func.func @transform_2(%arg0: i32) -> (i32, i32) {
    %c0_i32 = arith.constant 0 : i32
    %c0_i32_0 = arith.constant 0 : i32
    %c0_i32_1 = arith.constant 0 : i32
    return %c0_i32, %c0_i32_0 : i32, i32
  }
  func.func @transform_3(%arg0: i32) -> (i32, i32) {
    %c0_i32 = arith.constant 0 : i32
    %c0_i32_0 = arith.constant 0 : i32
    return %arg0, %c0_i32 : i32, i32
  }
}

module attributes {stable_mosaic.version = 11 : i64} {
  func.func @_lstm_recurrence_kernel(%arg0: i32, %arg1: memref<8x8x128xf32, #tpu.memory_space<vmem>>, %arg2: memref<32x128xbf16, #tpu.memory_space<vmem>>, %arg3: memref<8x8x32xbf16, #tpu.memory_space<vmem>>, %arg4: memref<8x32xf32, #tpu.memory_space<vmem>>, %arg5: memref<8x32xf32, #tpu.memory_space<vmem>>) attributes {dimension_semantics = [#tpu.dimension_semantics<parallel>], iteration_bounds = array<i64: 1>, scalar_prefetch = 0 : i64, scratch_operands = 0 : i64, tpu.core_type = #tpu.core_type<tc>, window_params = [{transform_indices = @transform_0, window_bounds = array<i64: 8, 8, 128>}, {pipeline_mode = #tpu.pipeline_mode<synchronous>, transform_indices = @transform_1, window_bounds = array<i64: 32, 128>}, {transform_indices = @transform_2, window_bounds = array<i64: 8, 8, 32>}, {transform_indices = @transform_3, window_bounds = array<i64: 8, 32>}, {transform_indices = @transform_4, window_bounds = array<i64: 8, 32>}]} {
    %c0 = arith.constant 0 : index
    %c0_0 = arith.constant 0 : index
    %0 = vector.load %arg2[%c0, %c0_0] : memref<32x128xbf16, #tpu.memory_space<vmem>>, vector<32x128xbf16>
    %cst = arith.constant 0.000000e+00 : f32
    %1 = vector.broadcast %cst : f32 to vector<8x32xf32>
    %c0_1 = arith.constant 0 : index
    %c0_2 = arith.constant 0 : index
    %2 = vector.load %arg4[%c0_1, %c0_2] : memref<8x32xf32, #tpu.memory_space<vmem>>, vector<8x32xf32>
    tpu.vector_store %arg4[%c0_1, %c0_2], %1 {strides = array<i32>} : memref<8x32xf32, #tpu.memory_space<vmem>>, vector<8x32xf32>,
    %cst_3 = arith.constant 0.000000e+00 : f32
    %3 = vector.broadcast %cst_3 : f32 to vector<8x32xf32>
    %c0_4 = arith.constant 0 : index
    %c0_5 = arith.constant 0 : index
    %4 = vector.load %arg5[%c0_4, %c0_5] : memref<8x32xf32, #tpu.memory_space<vmem>>, vector<8x32xf32>
    tpu.vector_store %arg5[%c0_4, %c0_5], %3 {strides = array<i32>} : memref<8x32xf32, #tpu.memory_space<vmem>>, vector<8x32xf32>,
    %c0_i32 = arith.constant 0 : i32
    %c0_6 = arith.constant 0 : index
    %c0_7 = arith.constant 0 : index
    %5 = vector.load %arg4[%c0_6, %c0_7] : memref<8x32xf32, #tpu.memory_space<vmem>>, vector<8x32xf32>
    %c0_8 = arith.constant 0 : index
    %c0_9 = arith.constant 0 : index
    %6 = vector.load %arg5[%c0_8, %c0_9] : memref<8x32xf32, #tpu.memory_space<vmem>>, vector<8x32xf32>
    %7 = arith.index_cast %c0_i32 : i32 to index
    %c0_10 = arith.constant 0 : index
    %c0_11 = arith.constant 0 : index
    %8 = vector.load %arg1[%7, %c0_10, %c0_11] : memref<8x8x128xf32, #tpu.memory_space<vmem>>, vector<1x8x128xf32>
    %9 = vector.shape_cast %8 : vector<1x8x128xf32> to vector<8x128xf32>
    %10 = arith.truncf %5 : vector<8x32xf32> to vector<8x32xbf16>
    %cst_12 = arith.constant dense<0.000000e+00> : vector<8x128xf32>
    %11 = tpu.matmul %10, %0, %cst_12 {dimension_numbers = #tpu.dot_dimension_numbers<[1], [0], [0], [1], [0, 0, 1, 1], [], []>} : vector<8x32xbf16>, vector<32x128xbf16>, vector<8x128xf32> -> vector<8x128xf32>
    %12 = arith.addf %9, %11 : vector<8x128xf32>
    %13 = vector.extract_strided_slice %12 {offsets = [0, 0], sizes = [8, 32], strides = [1, 1]} : vector<8x128xf32> to vector<8x32xf32>
    %14 = arith.negf %13 : vector<8x32xf32>
    %15 = math.exp %14 : vector<8x32xf32>
    %cst_13 = arith.constant 1.000000e+00 : f32
    %16 = vector.broadcast %cst_13 : f32 to vector<8x32xf32>
    %17 = arith.addf %16, %15 : vector<8x32xf32>
    %18 = arith.divf %16, %17 : vector<8x32xf32>
    %19 = vector.extract_strided_slice %12 {offsets = [0, 32], sizes = [8, 32], strides = [1, 1]} : vector<8x128xf32> to vector<8x32xf32>
    %20 = arith.negf %19 : vector<8x32xf32>
    %21 = math.exp %20 : vector<8x32xf32>
    %cst_14 = arith.constant 1.000000e+00 : f32
    %22 = vector.broadcast %cst_14 : f32 to vector<8x32xf32>
    %23 = arith.addf %22, %21 : vector<8x32xf32>
    %24 = arith.divf %22, %23 : vector<8x32xf32>
    %25 = vector.extract_strided_slice %12 {offsets = [0, 64], sizes = [8, 32], strides = [1, 1]} : vector<8x128xf32> to vector<8x32xf32>
    %26 = math.tanh %25 : vector<8x32xf32>
    %27 = vector.extract_strided_slice %12 {offsets = [0, 96], sizes = [8, 32], strides = [1, 1]} : vector<8x128xf32> to vector<8x32xf32>
    %28 = arith.negf %27 : vector<8x32xf32>
    %29 = math.exp %28 : vector<8x32xf32>
    %cst_15 = arith.constant 1.000000e+00 : f32
    %30 = vector.broadcast %cst_15 : f32 to vector<8x32xf32>
    %31 = arith.addf %30, %29 : vector<8x32xf32>
    %32 = arith.divf %30, %31 : vector<8x32xf32>
    %33 = arith.mulf %24, %6 : vector<8x32xf32>
    %34 = arith.mulf %18, %26 : vector<8x32xf32>
    %35 = arith.addf %33, %34 : vector<8x32xf32>
    %36 = math.tanh %35 : vector<8x32xf32>
    %37 = arith.mulf %32, %36 : vector<8x32xf32>
    %c0_16 = arith.constant 0 : index
    %c0_17 = arith.constant 0 : index
    %38 = vector.load %arg5[%c0_16, %c0_17] : memref<8x32xf32, #tpu.memory_space<vmem>>, vector<8x32xf32>
    tpu.vector_store %arg5[%c0_16, %c0_17], %35 {strides = array<i32>} : memref<8x32xf32, #tpu.memory_space<vmem>>, vector<8x32xf32>,
    %c0_18 = arith.constant 0 : index
    %c0_19 = arith.constant 0 : index
    %39 = vector.load %arg4[%c0_18, %c0_19] : memref<8x32xf32, #tpu.memory_space<vmem>>, vector<8x32xf32>
    tpu.vector_store %arg4[%c0_18, %c0_19], %37 {strides = array<i32>} : memref<8x32xf32, #tpu.memory_space<vmem>>, vector<8x32xf32>,
    %40 = arith.truncf %37 : vector<8x32xf32> to vector<8x32xbf16>
    %41 = arith.index_cast %c0_i32 : i32 to index
    %c0_20 = arith.constant 0 : index
    %c0_21 = arith.constant 0 : index
    %42 = vector.load %arg3[%41, %c0_20, %c0_21] : memref<8x8x32xbf16, #tpu.memory_space<vmem>>, vector<1x8x32xbf16>
    %43 = vector.shape_cast %42 : vector<1x8x32xbf16> to vector<8x32xbf16>
    %44 = vector.shape_cast %40 : vector<8x32xbf16> to vector<1x8x32xbf16>
    tpu.vector_store %arg3[%41, %c0_20, %c0_21], %44 {strides = array<i32>} : memref<8x8x32xbf16, #tpu.memory_space<vmem>>, vector<1x8x32xbf16>,
    %c1_i32 = arith.constant 1 : i32
    %c0_22 = arith.constant 0 : index
    %c0_23 = arith.constant 0 : index
    %45 = vector.load %arg4[%c0_22, %c0_23] : memref<8x32xf32, #tpu.memory_space<vmem>>, vector<8x32xf32>
    %c0_24 = arith.constant 0 : index
    %c0_25 = arith.constant 0 : index
    %46 = vector.load %arg5[%c0_24, %c0_25] : memref<8x32xf32, #tpu.memory_space<vmem>>, vector<8x32xf32>
    %47 = arith.index_cast %c1_i32 : i32 to index
    %c0_26 = arith.constant 0 : index
    %c0_27 = arith.constant 0 : index
    %48 = vector.load %arg1[%47, %c0_26, %c0_27] : memref<8x8x128xf32, #tpu.memory_space<vmem>>, vector<1x8x128xf32>
    %49 = vector.shape_cast %48 : vector<1x8x128xf32> to vector<8x128xf32>
    %50 = arith.truncf %45 : vector<8x32xf32> to vector<8x32xbf16>
    %cst_28 = arith.constant dense<0.000000e+00> : vector<8x128xf32>
    %51 = tpu.matmul %50, %0, %cst_28 {dimension_numbers = #tpu.dot_dimension_numbers<[1], [0], [0], [1], [0, 0, 1, 1], [], []>} : vector<8x32xbf16>, vector<32x128xbf16>, vector<8x128xf32> -> vector<8x128xf32>
    %52 = arith.addf %49, %51 : vector<8x128xf32>
    %53 = vector.extract_strided_slice %52 {offsets = [0, 0], sizes = [8, 32], strides = [1, 1]} : vector<8x128xf32> to vector<8x32xf32>
    %54 = arith.negf %53 : vector<8x32xf32>
    %55 = math.exp %54 : vector<8x32xf32>
    %cst_29 = arith.constant 1.000000e+00 : f32
    %56 = vector.broadcast %cst_29 : f32 to vector<8x32xf32>
    %57 = arith.addf %56, %55 : vector<8x32xf32>
    %58 = arith.divf %56, %57 : vector<8x32xf32>
    %59 = vector.extract_strided_slice %52 {offsets = [0, 32], sizes = [8, 32], strides = [1, 1]} : vector<8x128xf32> to vector<8x32xf32>
    %60 = arith.negf %59 : vector<8x32xf32>
    %61 = math.exp %60 : vector<8x32xf32>
    %cst_30 = arith.constant 1.000000e+00 : f32
    %62 = vector.broadcast %cst_30 : f32 to vector<8x32xf32>
    %63 = arith.addf %62, %61 : vector<8x32xf32>
    %64 = arith.divf %62, %63 : vector<8x32xf32>
    %65 = vector.extract_strided_slice %52 {offsets = [0, 64], sizes = [8, 32], strides = [1, 1]} : vector<8x128xf32> to vector<8x32xf32>
    %66 = math.tanh %65 : vector<8x32xf32>
    %67 = vector.extract_strided_slice %52 {offsets = [0, 96], sizes = [8, 32], strides = [1, 1]} : vector<8x128xf32> to vector<8x32xf32>
    %68 = arith.negf %67 : vector<8x32xf32>
    %69 = math.exp %68 : vector<8x32xf32>
    %cst_31 = arith.constant 1.000000e+00 : f32
    %70 = vector.broadcast %cst_31 : f32 to vector<8x32xf32>
    %71 = arith.addf %70, %69 : vector<8x32xf32>
    %72 = arith.divf %70, %71 : vector<8x32xf32>
    %73 = arith.mulf %64, %46 : vector<8x32xf32>
    %74 = arith.mulf %58, %66 : vector<8x32xf32>
    %75 = arith.addf %73, %74 : vector<8x32xf32>
    %76 = math.tanh %75 : vector<8x32xf32>
    %77 = arith.mulf %72, %76 : vector<8x32xf32>
    %c0_32 = arith.constant 0 : index
    %c0_33 = arith.constant 0 : index
    %78 = vector.load %arg5[%c0_32, %c0_33] : memref<8x32xf32, #tpu.memory_space<vmem>>, vector<8x32xf32>
    tpu.vector_store %arg5[%c0_32, %c0_33], %75 {strides = array<i32>} : memref<8x32xf32, #tpu.memory_space<vmem>>, vector<8x32xf32>,
    %c0_34 = arith.constant 0 : index
    %c0_35 = arith.constant 0 : index
    %79 = vector.load %arg4[%c0_34, %c0_35] : memref<8x32xf32, #tpu.memory_space<vmem>>, vector<8x32xf32>
    tpu.vector_store %arg4[%c0_34, %c0_35], %77 {strides = array<i32>} : memref<8x32xf32, #tpu.memory_space<vmem>>, vector<8x32xf32>,
    %80 = arith.truncf %77 : vector<8x32xf32> to vector<8x32xbf16>
    %81 = arith.index_cast %c1_i32 : i32 to index
    %c0_36 = arith.constant 0 : index
    %c0_37 = arith.constant 0 : index
    %82 = vector.load %arg3[%81, %c0_36, %c0_37] : memref<8x8x32xbf16, #tpu.memory_space<vmem>>, vector<1x8x32xbf16>
    %83 = vector.shape_cast %82 : vector<1x8x32xbf16> to vector<8x32xbf16>
    %84 = vector.shape_cast %80 : vector<8x32xbf16> to vector<1x8x32xbf16>
    tpu.vector_store %arg3[%81, %c0_36, %c0_37], %84 {strides = array<i32>} : memref<8x8x32xbf16, #tpu.memory_space<vmem>>, vector<1x8x32xbf16>,
    %c2_i32 = arith.constant 2 : i32
    %c0_38 = arith.constant 0 : index
    %c0_39 = arith.constant 0 : index
    %85 = vector.load %arg4[%c0_38, %c0_39] : memref<8x32xf32, #tpu.memory_space<vmem>>, vector<8x32xf32>
    %c0_40 = arith.constant 0 : index
    %c0_41 = arith.constant 0 : index
    %86 = vector.load %arg5[%c0_40, %c0_41] : memref<8x32xf32, #tpu.memory_space<vmem>>, vector<8x32xf32>
    %87 = arith.index_cast %c2_i32 : i32 to index
    %c0_42 = arith.constant 0 : index
    %c0_43 = arith.constant 0 : index
    %88 = vector.load %arg1[%87, %c0_42, %c0_43] : memref<8x8x128xf32, #tpu.memory_space<vmem>>, vector<1x8x128xf32>
    %89 = vector.shape_cast %88 : vector<1x8x128xf32> to vector<8x128xf32>
    %90 = arith.truncf %85 : vector<8x32xf32> to vector<8x32xbf16>
    %cst_44 = arith.constant dense<0.000000e+00> : vector<8x128xf32>
    %91 = tpu.matmul %90, %0, %cst_44 {dimension_numbers = #tpu.dot_dimension_numbers<[1], [0], [0], [1], [0, 0, 1, 1], [], []>} : vector<8x32xbf16>, vector<32x128xbf16>, vector<8x128xf32> -> vector<8x128xf32>
    %92 = arith.addf %89, %91 : vector<8x128xf32>
    %93 = vector.extract_strided_slice %92 {offsets = [0, 0], sizes = [8, 32], strides = [1, 1]} : vector<8x128xf32> to vector<8x32xf32>
    %94 = arith.negf %93 : vector<8x32xf32>
    %95 = math.exp %94 : vector<8x32xf32>
    %cst_45 = arith.constant 1.000000e+00 : f32
    %96 = vector.broadcast %cst_45 : f32 to vector<8x32xf32>
    %97 = arith.addf %96, %95 : vector<8x32xf32>
    %98 = arith.divf %96, %97 : vector<8x32xf32>
    %99 = vector.extract_strided_slice %92 {offsets = [0, 32], sizes = [8, 32], strides = [1, 1]} : vector<8x128xf32> to vector<8x32xf32>
    %100 = arith.negf %99 : vector<8x32xf32>
    %101 = math.exp %100 : vector<8x32xf32>
    %cst_46 = arith.constant 1.000000e+00 : f32
    %102 = vector.broadcast %cst_46 : f32 to vector<8x32xf32>
    %103 = arith.addf %102, %101 : vector<8x32xf32>
    %104 = arith.divf %102, %103 : vector<8x32xf32>
    %105 = vector.extract_strided_slice %92 {offsets = [0, 64], sizes = [8, 32], strides = [1, 1]} : vector<8x128xf32> to vector<8x32xf32>
    %106 = math.tanh %105 : vector<8x32xf32>
    %107 = vector.extract_strided_slice %92 {offsets = [0, 96], sizes = [8, 32], strides = [1, 1]} : vector<8x128xf32> to vector<8x32xf32>
    %108 = arith.negf %107 : vector<8x32xf32>
    %109 = math.exp %108 : vector<8x32xf32>
    %cst_47 = arith.constant 1.000000e+00 : f32
    %110 = vector.broadcast %cst_47 : f32 to vector<8x32xf32>
    %111 = arith.addf %110, %109 : vector<8x32xf32>
    %112 = arith.divf %110, %111 : vector<8x32xf32>
    %113 = arith.mulf %104, %86 : vector<8x32xf32>
    %114 = arith.mulf %98, %106 : vector<8x32xf32>
    %115 = arith.addf %113, %114 : vector<8x32xf32>
    %116 = math.tanh %115 : vector<8x32xf32>
    %117 = arith.mulf %112, %116 : vector<8x32xf32>
    %c0_48 = arith.constant 0 : index
    %c0_49 = arith.constant 0 : index
    %118 = vector.load %arg5[%c0_48, %c0_49] : memref<8x32xf32, #tpu.memory_space<vmem>>, vector<8x32xf32>
    tpu.vector_store %arg5[%c0_48, %c0_49], %115 {strides = array<i32>} : memref<8x32xf32, #tpu.memory_space<vmem>>, vector<8x32xf32>,
    %c0_50 = arith.constant 0 : index
    %c0_51 = arith.constant 0 : index
    %119 = vector.load %arg4[%c0_50, %c0_51] : memref<8x32xf32, #tpu.memory_space<vmem>>, vector<8x32xf32>
    tpu.vector_store %arg4[%c0_50, %c0_51], %117 {strides = array<i32>} : memref<8x32xf32, #tpu.memory_space<vmem>>, vector<8x32xf32>,
    %120 = arith.truncf %117 : vector<8x32xf32> to vector<8x32xbf16>
    %121 = arith.index_cast %c2_i32 : i32 to index
    %c0_52 = arith.constant 0 : index
    %c0_53 = arith.constant 0 : index
    %122 = vector.load %arg3[%121, %c0_52, %c0_53] : memref<8x8x32xbf16, #tpu.memory_space<vmem>>, vector<1x8x32xbf16>
    %123 = vector.shape_cast %122 : vector<1x8x32xbf16> to vector<8x32xbf16>
    %124 = vector.shape_cast %120 : vector<8x32xbf16> to vector<1x8x32xbf16>
    tpu.vector_store %arg3[%121, %c0_52, %c0_53], %124 {strides = array<i32>} : memref<8x8x32xbf16, #tpu.memory_space<vmem>>, vector<1x8x32xbf16>,
    %c3_i32 = arith.constant 3 : i32
    %c0_54 = arith.constant 0 : index
    %c0_55 = arith.constant 0 : index
    %125 = vector.load %arg4[%c0_54, %c0_55] : memref<8x32xf32, #tpu.memory_space<vmem>>, vector<8x32xf32>
    %c0_56 = arith.constant 0 : index
    %c0_57 = arith.constant 0 : index
    %126 = vector.load %arg5[%c0_56, %c0_57] : memref<8x32xf32, #tpu.memory_space<vmem>>, vector<8x32xf32>
    %127 = arith.index_cast %c3_i32 : i32 to index
    %c0_58 = arith.constant 0 : index
    %c0_59 = arith.constant 0 : index
    %128 = vector.load %arg1[%127, %c0_58, %c0_59] : memref<8x8x128xf32, #tpu.memory_space<vmem>>, vector<1x8x128xf32>
    %129 = vector.shape_cast %128 : vector<1x8x128xf32> to vector<8x128xf32>
    %130 = arith.truncf %125 : vector<8x32xf32> to vector<8x32xbf16>
    %cst_60 = arith.constant dense<0.000000e+00> : vector<8x128xf32>
    %131 = tpu.matmul %130, %0, %cst_60 {dimension_numbers = #tpu.dot_dimension_numbers<[1], [0], [0], [1], [0, 0, 1, 1], [], []>} : vector<8x32xbf16>, vector<32x128xbf16>, vector<8x128xf32> -> vector<8x128xf32>
    %132 = arith.addf %129, %131 : vector<8x128xf32>
    %133 = vector.extract_strided_slice %132 {offsets = [0, 0], sizes = [8, 32], strides = [1, 1]} : vector<8x128xf32> to vector<8x32xf32>
    %134 = arith.negf %133 : vector<8x32xf32>
    %135 = math.exp %134 : vector<8x32xf32>
    %cst_61 = arith.constant 1.000000e+00 : f32
    %136 = vector.broadcast %cst_61 : f32 to vector<8x32xf32>
    %137 = arith.addf %136, %135 : vector<8x32xf32>
    %138 = arith.divf %136, %137 : vector<8x32xf32>
    %139 = vector.extract_strided_slice %132 {offsets = [0, 32], sizes = [8, 32], strides = [1, 1]} : vector<8x128xf32> to vector<8x32xf32>
    %140 = arith.negf %139 : vector<8x32xf32>
    %141 = math.exp %140 : vector<8x32xf32>
    %cst_62 = arith.constant 1.000000e+00 : f32
    %142 = vector.broadcast %cst_62 : f32 to vector<8x32xf32>
    %143 = arith.addf %142, %141 : vector<8x32xf32>
    %144 = arith.divf %142, %143 : vector<8x32xf32>
    %145 = vector.extract_strided_slice %132 {offsets = [0, 64], sizes = [8, 32], strides = [1, 1]} : vector<8x128xf32> to vector<8x32xf32>
    %146 = math.tanh %145 : vector<8x32xf32>
    %147 = vector.extract_strided_slice %132 {offsets = [0, 96], sizes = [8, 32], strides = [1, 1]} : vector<8x128xf32> to vector<8x32xf32>
    %148 = arith.negf %147 : vector<8x32xf32>
    %149 = math.exp %148 : vector<8x32xf32>
    %cst_63 = arith.constant 1.000000e+00 : f32
    %150 = vector.broadcast %cst_63 : f32 to vector<8x32xf32>
    %151 = arith.addf %150, %149 : vector<8x32xf32>
    %152 = arith.divf %150, %151 : vector<8x32xf32>
    %153 = arith.mulf %144, %126 : vector<8x32xf32>
    %154 = arith.mulf %138, %146 : vector<8x32xf32>
    %155 = arith.addf %153, %154 : vector<8x32xf32>
    %156 = math.tanh %155 : vector<8x32xf32>
    %157 = arith.mulf %152, %156 : vector<8x32xf32>
    %c0_64 = arith.constant 0 : index
    %c0_65 = arith.constant 0 : index
    %158 = vector.load %arg5[%c0_64, %c0_65] : memref<8x32xf32, #tpu.memory_space<vmem>>, vector<8x32xf32>
    tpu.vector_store %arg5[%c0_64, %c0_65], %155 {strides = array<i32>} : memref<8x32xf32, #tpu.memory_space<vmem>>, vector<8x32xf32>,
    %c0_66 = arith.constant 0 : index
    %c0_67 = arith.constant 0 : index
    %159 = vector.load %arg4[%c0_66, %c0_67] : memref<8x32xf32, #tpu.memory_space<vmem>>, vector<8x32xf32>
    tpu.vector_store %arg4[%c0_66, %c0_67], %157 {strides = array<i32>} : memref<8x32xf32, #tpu.memory_space<vmem>>, vector<8x32xf32>,
    %160 = arith.truncf %157 : vector<8x32xf32> to vector<8x32xbf16>
    %161 = arith.index_cast %c3_i32 : i32 to index
    %c0_68 = arith.constant 0 : index
    %c0_69 = arith.constant 0 : index
    %162 = vector.load %arg3[%161, %c0_68, %c0_69] : memref<8x8x32xbf16, #tpu.memory_space<vmem>>, vector<1x8x32xbf16>
    %163 = vector.shape_cast %162 : vector<1x8x32xbf16> to vector<8x32xbf16>
    %164 = vector.shape_cast %160 : vector<8x32xbf16> to vector<1x8x32xbf16>
    tpu.vector_store %arg3[%161, %c0_68, %c0_69], %164 {strides = array<i32>} : memref<8x8x32xbf16, #tpu.memory_space<vmem>>, vector<1x8x32xbf16>,
    %c4_i32 = arith.constant 4 : i32
    %c0_70 = arith.constant 0 : index
    %c0_71 = arith.constant 0 : index
    %165 = vector.load %arg4[%c0_70, %c0_71] : memref<8x32xf32, #tpu.memory_space<vmem>>, vector<8x32xf32>
    %c0_72 = arith.constant 0 : index
    %c0_73 = arith.constant 0 : index
    %166 = vector.load %arg5[%c0_72, %c0_73] : memref<8x32xf32, #tpu.memory_space<vmem>>, vector<8x32xf32>
    %167 = arith.index_cast %c4_i32 : i32 to index
    %c0_74 = arith.constant 0 : index
    %c0_75 = arith.constant 0 : index
    %168 = vector.load %arg1[%167, %c0_74, %c0_75] : memref<8x8x128xf32, #tpu.memory_space<vmem>>, vector<1x8x128xf32>
    %169 = vector.shape_cast %168 : vector<1x8x128xf32> to vector<8x128xf32>
    %170 = arith.truncf %165 : vector<8x32xf32> to vector<8x32xbf16>
    %cst_76 = arith.constant dense<0.000000e+00> : vector<8x128xf32>
    %171 = tpu.matmul %170, %0, %cst_76 {dimension_numbers = #tpu.dot_dimension_numbers<[1], [0], [0], [1], [0, 0, 1, 1], [], []>} : vector<8x32xbf16>, vector<32x128xbf16>, vector<8x128xf32> -> vector<8x128xf32>
    %172 = arith.addf %169, %171 : vector<8x128xf32>
    %173 = vector.extract_strided_slice %172 {offsets = [0, 0], sizes = [8, 32], strides = [1, 1]} : vector<8x128xf32> to vector<8x32xf32>
    %174 = arith.negf %173 : vector<8x32xf32>
    %175 = math.exp %174 : vector<8x32xf32>
    %cst_77 = arith.constant 1.000000e+00 : f32
    %176 = vector.broadcast %cst_77 : f32 to vector<8x32xf32>
    %177 = arith.addf %176, %175 : vector<8x32xf32>
    %178 = arith.divf %176, %177 : vector<8x32xf32>
    %179 = vector.extract_strided_slice %172 {offsets = [0, 32], sizes = [8, 32], strides = [1, 1]} : vector<8x128xf32> to vector<8x32xf32>
    %180 = arith.negf %179 : vector<8x32xf32>
    %181 = math.exp %180 : vector<8x32xf32>
    %cst_78 = arith.constant 1.000000e+00 : f32
    %182 = vector.broadcast %cst_78 : f32 to vector<8x32xf32>
    %183 = arith.addf %182, %181 : vector<8x32xf32>
    %184 = arith.divf %182, %183 : vector<8x32xf32>
    %185 = vector.extract_strided_slice %172 {offsets = [0, 64], sizes = [8, 32], strides = [1, 1]} : vector<8x128xf32> to vector<8x32xf32>
    %186 = math.tanh %185 : vector<8x32xf32>
    %187 = vector.extract_strided_slice %172 {offsets = [0, 96], sizes = [8, 32], strides = [1, 1]} : vector<8x128xf32> to vector<8x32xf32>
    %188 = arith.negf %187 : vector<8x32xf32>
    %189 = math.exp %188 : vector<8x32xf32>
    %cst_79 = arith.constant 1.000000e+00 : f32
    %190 = vector.broadcast %cst_79 : f32 to vector<8x32xf32>
    %191 = arith.addf %190, %189 : vector<8x32xf32>
    %192 = arith.divf %190, %191 : vector<8x32xf32>
    %193 = arith.mulf %184, %166 : vector<8x32xf32>
    %194 = arith.mulf %178, %186 : vector<8x32xf32>
    %195 = arith.addf %193, %194 : vector<8x32xf32>
    %196 = math.tanh %195 : vector<8x32xf32>
    %197 = arith.mulf %192, %196 : vector<8x32xf32>
    %c0_80 = arith.constant 0 : index
    %c0_81 = arith.constant 0 : index
    %198 = vector.load %arg5[%c0_80, %c0_81] : memref<8x32xf32, #tpu.memory_space<vmem>>, vector<8x32xf32>
    tpu.vector_store %arg5[%c0_80, %c0_81], %195 {strides = array<i32>} : memref<8x32xf32, #tpu.memory_space<vmem>>, vector<8x32xf32>,
    %c0_82 = arith.constant 0 : index
    %c0_83 = arith.constant 0 : index
    %199 = vector.load %arg4[%c0_82, %c0_83] : memref<8x32xf32, #tpu.memory_space<vmem>>, vector<8x32xf32>
    tpu.vector_store %arg4[%c0_82, %c0_83], %197 {strides = array<i32>} : memref<8x32xf32, #tpu.memory_space<vmem>>, vector<8x32xf32>,
    %200 = arith.truncf %197 : vector<8x32xf32> to vector<8x32xbf16>
    %201 = arith.index_cast %c4_i32 : i32 to index
    %c0_84 = arith.constant 0 : index
    %c0_85 = arith.constant 0 : index
    %202 = vector.load %arg3[%201, %c0_84, %c0_85] : memref<8x8x32xbf16, #tpu.memory_space<vmem>>, vector<1x8x32xbf16>
    %203 = vector.shape_cast %202 : vector<1x8x32xbf16> to vector<8x32xbf16>
    %204 = vector.shape_cast %200 : vector<8x32xbf16> to vector<1x8x32xbf16>
    tpu.vector_store %arg3[%201, %c0_84, %c0_85], %204 {strides = array<i32>} : memref<8x8x32xbf16, #tpu.memory_space<vmem>>, vector<1x8x32xbf16>,
    %c5_i32 = arith.constant 5 : i32
    %c0_86 = arith.constant 0 : index
    %c0_87 = arith.constant 0 : index
    %205 = vector.load %arg4[%c0_86, %c0_87] : memref<8x32xf32, #tpu.memory_space<vmem>>, vector<8x32xf32>
    %c0_88 = arith.constant 0 : index
    %c0_89 = arith.constant 0 : index
    %206 = vector.load %arg5[%c0_88, %c0_89] : memref<8x32xf32, #tpu.memory_space<vmem>>, vector<8x32xf32>
    %207 = arith.index_cast %c5_i32 : i32 to index
    %c0_90 = arith.constant 0 : index
    %c0_91 = arith.constant 0 : index
    %208 = vector.load %arg1[%207, %c0_90, %c0_91] : memref<8x8x128xf32, #tpu.memory_space<vmem>>, vector<1x8x128xf32>
    %209 = vector.shape_cast %208 : vector<1x8x128xf32> to vector<8x128xf32>
    %210 = arith.truncf %205 : vector<8x32xf32> to vector<8x32xbf16>
    %cst_92 = arith.constant dense<0.000000e+00> : vector<8x128xf32>
    %211 = tpu.matmul %210, %0, %cst_92 {dimension_numbers = #tpu.dot_dimension_numbers<[1], [0], [0], [1], [0, 0, 1, 1], [], []>} : vector<8x32xbf16>, vector<32x128xbf16>, vector<8x128xf32> -> vector<8x128xf32>
    %212 = arith.addf %209, %211 : vector<8x128xf32>
    %213 = vector.extract_strided_slice %212 {offsets = [0, 0], sizes = [8, 32], strides = [1, 1]} : vector<8x128xf32> to vector<8x32xf32>
    %214 = arith.negf %213 : vector<8x32xf32>
    %215 = math.exp %214 : vector<8x32xf32>
    %cst_93 = arith.constant 1.000000e+00 : f32
    %216 = vector.broadcast %cst_93 : f32 to vector<8x32xf32>
    %217 = arith.addf %216, %215 : vector<8x32xf32>
    %218 = arith.divf %216, %217 : vector<8x32xf32>
    %219 = vector.extract_strided_slice %212 {offsets = [0, 32], sizes = [8, 32], strides = [1, 1]} : vector<8x128xf32> to vector<8x32xf32>
    %220 = arith.negf %219 : vector<8x32xf32>
    %221 = math.exp %220 : vector<8x32xf32>
    %cst_94 = arith.constant 1.000000e+00 : f32
    %222 = vector.broadcast %cst_94 : f32 to vector<8x32xf32>
    %223 = arith.addf %222, %221 : vector<8x32xf32>
    %224 = arith.divf %222, %223 : vector<8x32xf32>
    %225 = vector.extract_strided_slice %212 {offsets = [0, 64], sizes = [8, 32], strides = [1, 1]} : vector<8x128xf32> to vector<8x32xf32>
    %226 = math.tanh %225 : vector<8x32xf32>
    %227 = vector.extract_strided_slice %212 {offsets = [0, 96], sizes = [8, 32], strides = [1, 1]} : vector<8x128xf32> to vector<8x32xf32>
    %228 = arith.negf %227 : vector<8x32xf32>
    %229 = math.exp %228 : vector<8x32xf32>
    %cst_95 = arith.constant 1.000000e+00 : f32
    %230 = vector.broadcast %cst_95 : f32 to vector<8x32xf32>
    %231 = arith.addf %230, %229 : vector<8x32xf32>
    %232 = arith.divf %230, %231 : vector<8x32xf32>
    %233 = arith.mulf %224, %206 : vector<8x32xf32>
    %234 = arith.mulf %218, %226 : vector<8x32xf32>
    %235 = arith.addf %233, %234 : vector<8x32xf32>
    %236 = math.tanh %235 : vector<8x32xf32>
    %237 = arith.mulf %232, %236 : vector<8x32xf32>
    %c0_96 = arith.constant 0 : index
    %c0_97 = arith.constant 0 : index
    %238 = vector.load %arg5[%c0_96, %c0_97] : memref<8x32xf32, #tpu.memory_space<vmem>>, vector<8x32xf32>
    tpu.vector_store %arg5[%c0_96, %c0_97], %235 {strides = array<i32>} : memref<8x32xf32, #tpu.memory_space<vmem>>, vector<8x32xf32>,
    %c0_98 = arith.constant 0 : index
    %c0_99 = arith.constant 0 : index
    %239 = vector.load %arg4[%c0_98, %c0_99] : memref<8x32xf32, #tpu.memory_space<vmem>>, vector<8x32xf32>
    tpu.vector_store %arg4[%c0_98, %c0_99], %237 {strides = array<i32>} : memref<8x32xf32, #tpu.memory_space<vmem>>, vector<8x32xf32>,
    %240 = arith.truncf %237 : vector<8x32xf32> to vector<8x32xbf16>
    %241 = arith.index_cast %c5_i32 : i32 to index
    %c0_100 = arith.constant 0 : index
    %c0_101 = arith.constant 0 : index
    %242 = vector.load %arg3[%241, %c0_100, %c0_101] : memref<8x8x32xbf16, #tpu.memory_space<vmem>>, vector<1x8x32xbf16>
    %243 = vector.shape_cast %242 : vector<1x8x32xbf16> to vector<8x32xbf16>
    %244 = vector.shape_cast %240 : vector<8x32xbf16> to vector<1x8x32xbf16>
    tpu.vector_store %arg3[%241, %c0_100, %c0_101], %244 {strides = array<i32>} : memref<8x8x32xbf16, #tpu.memory_space<vmem>>, vector<1x8x32xbf16>,
    %c6_i32 = arith.constant 6 : i32
    %c0_102 = arith.constant 0 : index
    %c0_103 = arith.constant 0 : index
    %245 = vector.load %arg4[%c0_102, %c0_103] : memref<8x32xf32, #tpu.memory_space<vmem>>, vector<8x32xf32>
    %c0_104 = arith.constant 0 : index
    %c0_105 = arith.constant 0 : index
    %246 = vector.load %arg5[%c0_104, %c0_105] : memref<8x32xf32, #tpu.memory_space<vmem>>, vector<8x32xf32>
    %247 = arith.index_cast %c6_i32 : i32 to index
    %c0_106 = arith.constant 0 : index
    %c0_107 = arith.constant 0 : index
    %248 = vector.load %arg1[%247, %c0_106, %c0_107] : memref<8x8x128xf32, #tpu.memory_space<vmem>>, vector<1x8x128xf32>
    %249 = vector.shape_cast %248 : vector<1x8x128xf32> to vector<8x128xf32>
    %250 = arith.truncf %245 : vector<8x32xf32> to vector<8x32xbf16>
    %cst_108 = arith.constant dense<0.000000e+00> : vector<8x128xf32>
    %251 = tpu.matmul %250, %0, %cst_108 {dimension_numbers = #tpu.dot_dimension_numbers<[1], [0], [0], [1], [0, 0, 1, 1], [], []>} : vector<8x32xbf16>, vector<32x128xbf16>, vector<8x128xf32> -> vector<8x128xf32>
    %252 = arith.addf %249, %251 : vector<8x128xf32>
    %253 = vector.extract_strided_slice %252 {offsets = [0, 0], sizes = [8, 32], strides = [1, 1]} : vector<8x128xf32> to vector<8x32xf32>
    %254 = arith.negf %253 : vector<8x32xf32>
    %255 = math.exp %254 : vector<8x32xf32>
    %cst_109 = arith.constant 1.000000e+00 : f32
    %256 = vector.broadcast %cst_109 : f32 to vector<8x32xf32>
    %257 = arith.addf %256, %255 : vector<8x32xf32>
    %258 = arith.divf %256, %257 : vector<8x32xf32>
    %259 = vector.extract_strided_slice %252 {offsets = [0, 32], sizes = [8, 32], strides = [1, 1]} : vector<8x128xf32> to vector<8x32xf32>
    %260 = arith.negf %259 : vector<8x32xf32>
    %261 = math.exp %260 : vector<8x32xf32>
    %cst_110 = arith.constant 1.000000e+00 : f32
    %262 = vector.broadcast %cst_110 : f32 to vector<8x32xf32>
    %263 = arith.addf %262, %261 : vector<8x32xf32>
    %264 = arith.divf %262, %263 : vector<8x32xf32>
    %265 = vector.extract_strided_slice %252 {offsets = [0, 64], sizes = [8, 32], strides = [1, 1]} : vector<8x128xf32> to vector<8x32xf32>
    %266 = math.tanh %265 : vector<8x32xf32>
    %267 = vector.extract_strided_slice %252 {offsets = [0, 96], sizes = [8, 32], strides = [1, 1]} : vector<8x128xf32> to vector<8x32xf32>
    %268 = arith.negf %267 : vector<8x32xf32>
    %269 = math.exp %268 : vector<8x32xf32>
    %cst_111 = arith.constant 1.000000e+00 : f32
    %270 = vector.broadcast %cst_111 : f32 to vector<8x32xf32>
    %271 = arith.addf %270, %269 : vector<8x32xf32>
    %272 = arith.divf %270, %271 : vector<8x32xf32>
    %273 = arith.mulf %264, %246 : vector<8x32xf32>
    %274 = arith.mulf %258, %266 : vector<8x32xf32>
    %275 = arith.addf %273, %274 : vector<8x32xf32>
    %276 = math.tanh %275 : vector<8x32xf32>
    %277 = arith.mulf %272, %276 : vector<8x32xf32>
    %c0_112 = arith.constant 0 : index
    %c0_113 = arith.constant 0 : index
    %278 = vector.load %arg5[%c0_112, %c0_113] : memref<8x32xf32, #tpu.memory_space<vmem>>, vector<8x32xf32>
    tpu.vector_store %arg5[%c0_112, %c0_113], %275 {strides = array<i32>} : memref<8x32xf32, #tpu.memory_space<vmem>>, vector<8x32xf32>,
    %c0_114 = arith.constant 0 : index
    %c0_115 = arith.constant 0 : index
    %279 = vector.load %arg4[%c0_114, %c0_115] : memref<8x32xf32, #tpu.memory_space<vmem>>, vector<8x32xf32>
    tpu.vector_store %arg4[%c0_114, %c0_115], %277 {strides = array<i32>} : memref<8x32xf32, #tpu.memory_space<vmem>>, vector<8x32xf32>,
    %280 = arith.truncf %277 : vector<8x32xf32> to vector<8x32xbf16>
    %281 = arith.index_cast %c6_i32 : i32 to index
    %c0_116 = arith.constant 0 : index
    %c0_117 = arith.constant 0 : index
    %282 = vector.load %arg3[%281, %c0_116, %c0_117] : memref<8x8x32xbf16, #tpu.memory_space<vmem>>, vector<1x8x32xbf16>
    %283 = vector.shape_cast %282 : vector<1x8x32xbf16> to vector<8x32xbf16>
    %284 = vector.shape_cast %280 : vector<8x32xbf16> to vector<1x8x32xbf16>
    tpu.vector_store %arg3[%281, %c0_116, %c0_117], %284 {strides = array<i32>} : memref<8x8x32xbf16, #tpu.memory_space<vmem>>, vector<1x8x32xbf16>,
    %c7_i32 = arith.constant 7 : i32
    %c0_118 = arith.constant 0 : index
    %c0_119 = arith.constant 0 : index
    %285 = vector.load %arg4[%c0_118, %c0_119] : memref<8x32xf32, #tpu.memory_space<vmem>>, vector<8x32xf32>
    %c0_120 = arith.constant 0 : index
    %c0_121 = arith.constant 0 : index
    %286 = vector.load %arg5[%c0_120, %c0_121] : memref<8x32xf32, #tpu.memory_space<vmem>>, vector<8x32xf32>
    %287 = arith.index_cast %c7_i32 : i32 to index
    %c0_122 = arith.constant 0 : index
    %c0_123 = arith.constant 0 : index
    %288 = vector.load %arg1[%287, %c0_122, %c0_123] : memref<8x8x128xf32, #tpu.memory_space<vmem>>, vector<1x8x128xf32>
    %289 = vector.shape_cast %288 : vector<1x8x128xf32> to vector<8x128xf32>
    %290 = arith.truncf %285 : vector<8x32xf32> to vector<8x32xbf16>
    %cst_124 = arith.constant dense<0.000000e+00> : vector<8x128xf32>
    %291 = tpu.matmul %290, %0, %cst_124 {dimension_numbers = #tpu.dot_dimension_numbers<[1], [0], [0], [1], [0, 0, 1, 1], [], []>} : vector<8x32xbf16>, vector<32x128xbf16>, vector<8x128xf32> -> vector<8x128xf32>
    %292 = arith.addf %289, %291 : vector<8x128xf32>
    %293 = vector.extract_strided_slice %292 {offsets = [0, 0], sizes = [8, 32], strides = [1, 1]} : vector<8x128xf32> to vector<8x32xf32>
    %294 = arith.negf %293 : vector<8x32xf32>
    %295 = math.exp %294 : vector<8x32xf32>
    %cst_125 = arith.constant 1.000000e+00 : f32
    %296 = vector.broadcast %cst_125 : f32 to vector<8x32xf32>
    %297 = arith.addf %296, %295 : vector<8x32xf32>
    %298 = arith.divf %296, %297 : vector<8x32xf32>
    %299 = vector.extract_strided_slice %292 {offsets = [0, 32], sizes = [8, 32], strides = [1, 1]} : vector<8x128xf32> to vector<8x32xf32>
    %300 = arith.negf %299 : vector<8x32xf32>
    %301 = math.exp %300 : vector<8x32xf32>
    %cst_126 = arith.constant 1.000000e+00 : f32
    %302 = vector.broadcast %cst_126 : f32 to vector<8x32xf32>
    %303 = arith.addf %302, %301 : vector<8x32xf32>
    %304 = arith.divf %302, %303 : vector<8x32xf32>
    %305 = vector.extract_strided_slice %292 {offsets = [0, 64], sizes = [8, 32], strides = [1, 1]} : vector<8x128xf32> to vector<8x32xf32>
    %306 = math.tanh %305 : vector<8x32xf32>
    %307 = vector.extract_strided_slice %292 {offsets = [0, 96], sizes = [8, 32], strides = [1, 1]} : vector<8x128xf32> to vector<8x32xf32>
    %308 = arith.negf %307 : vector<8x32xf32>
    %309 = math.exp %308 : vector<8x32xf32>
    %cst_127 = arith.constant 1.000000e+00 : f32
    %310 = vector.broadcast %cst_127 : f32 to vector<8x32xf32>
    %311 = arith.addf %310, %309 : vector<8x32xf32>
    %312 = arith.divf %310, %311 : vector<8x32xf32>
    %313 = arith.mulf %304, %286 : vector<8x32xf32>
    %314 = arith.mulf %298, %306 : vector<8x32xf32>
    %315 = arith.addf %313, %314 : vector<8x32xf32>
    %316 = math.tanh %315 : vector<8x32xf32>
    %317 = arith.mulf %312, %316 : vector<8x32xf32>
    %c0_128 = arith.constant 0 : index
    %c0_129 = arith.constant 0 : index
    %318 = vector.load %arg5[%c0_128, %c0_129] : memref<8x32xf32, #tpu.memory_space<vmem>>, vector<8x32xf32>
    tpu.vector_store %arg5[%c0_128, %c0_129], %315 {strides = array<i32>} : memref<8x32xf32, #tpu.memory_space<vmem>>, vector<8x32xf32>,
    %c0_130 = arith.constant 0 : index
    %c0_131 = arith.constant 0 : index
    %319 = vector.load %arg4[%c0_130, %c0_131] : memref<8x32xf32, #tpu.memory_space<vmem>>, vector<8x32xf32>
    tpu.vector_store %arg4[%c0_130, %c0_131], %317 {strides = array<i32>} : memref<8x32xf32, #tpu.memory_space<vmem>>, vector<8x32xf32>,
    %320 = arith.truncf %317 : vector<8x32xf32> to vector<8x32xbf16>
    %321 = arith.index_cast %c7_i32 : i32 to index
    %c0_132 = arith.constant 0 : index
    %c0_133 = arith.constant 0 : index
    %322 = vector.load %arg3[%321, %c0_132, %c0_133] : memref<8x8x32xbf16, #tpu.memory_space<vmem>>, vector<1x8x32xbf16>
    %323 = vector.shape_cast %322 : vector<1x8x32xbf16> to vector<8x32xbf16>
    %324 = vector.shape_cast %320 : vector<8x32xbf16> to vector<1x8x32xbf16>
    tpu.vector_store %arg3[%321, %c0_132, %c0_133], %324 {strides = array<i32>} : memref<8x8x32xbf16, #tpu.memory_space<vmem>>, vector<1x8x32xbf16>,
    %c8_i32 = arith.constant 8 : i32
    return
  }
  func.func @transform_0(%arg0: i32) -> (i32, i32, i32) {
    %c0_i32 = arith.constant 0 : i32
    %c0_i32_0 = arith.constant 0 : i32
    %c0_i32_1 = arith.constant 0 : i32
    return %c0_i32, %arg0, %c0_i32_0 : i32, i32, i32
  }
  func.func @transform_1(%arg0: i32) -> (i32, i32) {
    %c0_i32 = arith.constant 0 : i32
    %c0_i32_0 = arith.constant 0 : i32
    %c0_i32_1 = arith.constant 0 : i32
    return %c0_i32, %c0_i32_0 : i32, i32
  }
  func.func @transform_2(%arg0: i32) -> (i32, i32, i32) {
    %c0_i32 = arith.constant 0 : i32
    %c0_i32_0 = arith.constant 0 : i32
    %c0_i32_1 = arith.constant 0 : i32
    return %c0_i32, %arg0, %c0_i32_0 : i32, i32, i32
  }
  func.func @transform_3(%arg0: i32) -> (i32, i32) {
    %c0_i32 = arith.constant 0 : i32
    %c0_i32_0 = arith.constant 0 : i32
    return %arg0, %c0_i32 : i32, i32
  }
  func.func @transform_4(%arg0: i32) -> (i32, i32) {
    %c0_i32 = arith.constant 0 : i32
    %c0_i32_0 = arith.constant 0 : i32
    return %arg0, %c0_i32 : i32, i32
  }
}

</mosaic_0001>

<bundles_post_ra>
// kernel: lstm_model_forward.3
= control target key start
LH: loop header
LB: loop body
LE: loop exit
PB: predicated region body
PF: predicated region fallthrough
CT: control target
= control target key end

     0   :  { %vm58_vm0 = vcmask 130048   ;;  %s242_s1 = inlined_call_operand.vmem [shape: bf16[16,128], index: 1, kind: input, shape index: {}]   ;;  %s243_s0 = inlined_call_operand.vmem [shape: bf16[64,16], index: 0, kind: input, shape index: {}]   ;;  %s244_s2 = inlined_call_operand.vmem [shape: f32[1,128], index: 2, kind: input, shape index: {}]   ;;  %s245_s3 = inlined_call_operand.vmem [shape: f32[64,128], index: 3, kind: output, shape index: {}]  }
   0x1   :  { %v175_v0 = vld [vmem:[%s242_s1] sm:$0xff]   ;;  %v177_v2 = vld [vmem:[%s243_s0 + $0x10] sm:$0xff]   ;;  %v178_v3 = vld [vmem:[%s243_s0 + $0x8] sm:$0xff]  }
   0x2   :  { %v176_v1 = vld [vmem:[%s243_s0] sm:$0xff]   ;;  %163 = vmatprep.subr.bf16.mxu0 %v175_v0  ;;  %173 = vmatprep.subr.bf16.mxu1 %v175_v0  ;;  %v179_v4 = vld [vmem:[%s243_s0 + $0x18] sm:$0xff]  }
   0x3   :  { %164 = vmatpush3.bf16.msra.mxu0 %v175_v0  ;;  %174 = vmatpush3.bf16.msra.mxu1 %v175_v0  ;;  %v148_v5 = vld [vmem:[%s244_s2] ss:$0 sm:$0xff] }
   0x4   :  { %165 = vmatprep.mubr.msk.bf16.mxu0 %vm58_vm0, %v176_v1  ;;  %169 = vmatprep.mubr.msk.bf16.mxu1 %vm58_vm0, %v177_v2 }
   0x6   :  { %166 = vmatmul.mubr.msk.bf16.vlgmr.msra.gmra.mrb[0].mxu0 %vm58_vm0, %v178_v3  ;;  %170 = vmatmul.mubr.msk.bf16.vlgmr.msra.gmra.mrb[0].mxu1 %vm58_vm0, %v179_v4 }
  0xd9   :  { %v167_v6 = vpop.f32.mrb[0].mxu0  ;;  %v171_v7 = vpop.f32.mrb[0].mxu1 }
  0xda   :  { %v114_v8 = vadd.f32 %v167_v6, %v148_v5  ;;  %v130_v9 = vadd.f32 %v171_v7, %v148_v5  ;;  %v105_v10 = vpop.f32.mrb[1].mxu0  ;;  %v121_v11 = vpop.f32.mrb[1].mxu1 }
  0xdb   :  { %v106_v12 = vadd.f32 %v148_v5, %v105_v10  ;;  %v122_v13 = vadd.f32 %v148_v5, %v121_v11  ;;  %v168_v14 = vpop.f32.mrb[2].mxu0  ;;  %v172_v15 = vpop.f32.mrb[2].mxu1 }
  0xdc   :  { %138 = vst [vmem:[%s245_s3 + $0x10] sm:$0xff] %v114_v8  ;;  %142 = vst [vmem:[%s245_s3 + $0x30] sm:$0xff] %v130_v9  ;;  %v117_v16 = vadd.f32 %v168_v14, %v148_v5  ;;  %v133_v17 = vadd.f32 %v172_v15, %v148_v5  ;;  %v108_v18 = vpop.f32.mrb[3].mxu0  ;;  %v124_v19 = vpop.f32.mrb[3].mxu1 }
  0xdd   :  { %136 = vst [vmem:[%s245_s3] sm:$0xff] %v106_v12  ;;  %140 = vst [vmem:[%s245_s3 + $0x20] sm:$0xff] %v122_v13  ;;  %v109_v20 = vadd.f32 %v148_v5, %v108_v18  ;;  %v125_v21 = vadd.f32 %v148_v5, %v124_v19 }
  0xde   :  { %139 = vst [vmem:[%s245_s3 + $0x18] sm:$0xff] %v117_v16  ;;  %143 = vst [vmem:[%s245_s3 + $0x38] sm:$0xff] %v133_v17 }
  0xdf   :  { %137 = vst [vmem:[%s245_s3 + $0x8] sm:$0xff] %v109_v20  ;;  %141 = vst [vmem:[%s245_s3 + $0x28] sm:$0xff] %v125_v21 }

// kernel: lstm_model_forward.5
= control target key start
LH: loop header
LB: loop body
LE: loop exit
PB: predicated region body
PF: predicated region fallthrough
CT: control target
= control target key end

     0   :  { %vm66_vm0 = vcmask 261120   ;;  %s448_s1 = inlined_call_operand.vmem [shape: bf16[32,32], index: 1, kind: input, shape index: {}]   ;;  %s449_s0 = inlined_call_operand.vmem [shape: bf16[64,32], index: 0, kind: input, shape index: {}]   ;;  %s450_s2 = inlined_call_operand.vmem [shape: f32[1,32], index: 2, kind: input, shape index: {}]   ;;  %s451_s3 = inlined_call_operand.vmem [shape: f32[64,32], index: 3, kind: output, shape index: {}]  }
   0x1   :  { %v285_v0 = vld [vmem:[%s448_s1] sm:$0xff]   ;;  %v286_v1 = vld [vmem:[%s448_s1 + $0x8] sm:$0xff]   ;;  %v289_v3 = vld [vmem:[%s449_s0 + $0x10] sm:$0xff]  }
   0x2   :  { %269 = vmatprep.subr.bf16.mxu0 %v285_v0  ;;  %281 = vmatprep.subr.bf16.mxu1 %v285_v0  ;;  %v287_v2 = vld [vmem:[%s449_s0] sm:$0xff]   ;;  %v288_v4 = vld [vmem:[%s449_s0 + $0x8] sm:$0xff]   ;;  %v290_v5 = vld [vmem:[%s449_s0 + $0x18] sm:$0xff]  }
   0x3   :  { %270 = vmatpush3.bf16.msra.mxu0 %v285_v0  ;;  %283 = vmatpush3.bf16.msra.mxu1 %v285_v0  ;;  %v252_v6 = vld [vmem:[%s450_s2] ss:$0 sm:$0xff] }
   0x4   :  { %271 = vmatprep.subr.bf16.mxu0 %v286_v1  ;;  %282 = vmatprep.subr.bf16.mxu1 %v286_v1 }
   0x5   :  { %273 = vmatprep.mubr.msk.bf16.mxu0 %vm66_vm0, %v287_v2  ;;  %277 = vmatprep.mubr.msk.bf16.mxu1 %vm66_vm0, %v289_v3 }
   0x7   :  { %272 = vmatpush3.bf16.msra.mxu0 %v286_v1  ;;  %284 = vmatpush3.bf16.msra.mxu1 %v286_v1 }
   0xa   :  { %274 = vmatmul.mubr.msk.bf16.vlgmr.msra.gmra.mrb[0].mxu0 %vm66_vm0, %v288_v4  ;;  %278 = vmatmul.mubr.msk.bf16.vlgmr.msra.gmra.mrb[0].mxu1 %vm66_vm0, %v290_v5 }
  0xdd   :  { %v275_v7 = vpop.f32.mrb[0].mxu0  ;;  %v279_v8 = vpop.f32.mrb[0].mxu1 }
  0xde   :  { %v122_v9 = vadd.f32 %v275_v7, %v252_v6  ;;  %v113_v10 = vpop.f32.mrb[1].mxu0  ;;  %v129_v11 = vpop.f32.mrb[1].mxu1  ;;  %v138_v27 = vadd.f32 %v279_v8, %v252_v6 }
  0xdf   :  { %v114_v12 = vadd.f32 %v252_v6, %v113_v10  ;;  %v276_v13 = vpop.f32.mrb[2].mxu0  ;;  %v130_v14 = vadd.f32 %v252_v6, %v129_v11  ;;  %v280_v15 = vpop.f32.mrb[2].mxu1 }
  0xe0   :  { %v125_v16 = vadd.f32 %v276_v13, %v252_v6  ;;  %v116_v17 = vpop.f32.mrb[3].mxu0  ;;  %v132_v18 = vpop.f32.mrb[3].mxu1  ;;  %v150_v19 = vsel %vm66_vm0, %v122_v9, -inf  ;;  %v141_v25 = vadd.f32 %v280_v15, %v252_v6  ;;  %v162_v30 = vsel %vm66_vm0, %v138_v27, -inf }
  0xe1   :  { %151 = vmax.xlane.f32.xlu1 %v150_v19  ;;  %v144_v20 = vsel %vm66_vm0, %v114_v12, -inf  ;;  %v156_v21 = vsel %vm66_vm0, %v130_v14, -inf  ;;  %v133_v22 = vadd.f32 %v252_v6, %v132_v18  ;;  %v117_v24 = vadd.f32 %v252_v6, %v116_v17 }
  0xe2   :  { %145 = vmax.xlane.f32.xlu0 %v144_v20  ;;  %v153_v23 = vsel %vm66_vm0, %v125_v16, -inf  ;;  %v165_v29 = vsel %vm66_vm0, %v141_v25, -inf }
  0xe3   :  { %v159_v26 = vsel %vm66_vm0, %v133_v22, -inf  ;;  %v147_v28 = vsel %vm66_vm0, %v117_v24, -inf }
  0xe5   :  { %154 = vmax.xlane.f32.xlu1 %v153_v23 }
  0xe6   :  { %157 = vmax.xlane.f32.xlu0 %v156_v21 }
  0xe9   :  { %160 = vmax.xlane.f32.xlu1 %v159_v26 }
  0xea   :  { %148 = vmax.xlane.f32.xlu0 %v147_v28 }
  0xed   :  { %166 = vmax.xlane.f32.xlu1 %v165_v29 }
  0xee   :  { %163 = vmax.xlane.f32.xlu0 %v162_v30 }
 0x16e   :  { %v152_v31 = vpop.xlane.xlu1 %151 }
 0x16f   :  { %v376_v32 = vsub.f32 %v122_v9, %v152_v31  ;;  %v146_v33 = vpop.xlane.xlu0 %145 }
 0x170   :  { %v378_v34 = vsub.f32 %v114_v12, %v146_v33 }
 0x171   :  { %v180_v35 = vmul.f32 1.442695, %v376_v32 }
 0x172   :  { %v176_v36 = vmul.f32 1.442695, %v378_v34  ;;  %v155_v37 = vpop.xlane.xlu1 %154 }
 0x173   :  { %291 = vpow2.f32 %v180_v35  ;;  %v382_v38 = vsub.f32 %v125_v16, %v155_v37  ;;  %v158_v39 = vpop.xlane.xlu0 %157 }
 0x174   :  { %v384_v40 = vsub.f32 %v130_v14, %v158_v39  ;;  %293 = vpow2.f32 %v176_v36 }
 0x175   :  { %v182_v41 = vmul.f32 1.442695, %v382_v38 }
 0x176   :  { %v184_v42 = vmul.f32 1.442695, %v384_v40  ;;  %v161_v43 = vpop.xlane.xlu1 %160 }
 0x177   :  { %295 = vpow2.f32 %v182_v41  ;;  %v388_v44 = vsub.f32 %v133_v22, %v161_v43  ;;  %v149_v45 = vpop.xlane.xlu0 %148 }
 0x178   :  { %v390_v46 = vsub.f32 %v117_v24, %v149_v45  ;;  %297 = vpow2.f32 %v184_v42 }
 0x179   :  { %v186_v47 = vmul.f32 1.442695, %v388_v44 }
 0x17a   :  { %v178_v48 = vmul.f32 1.442695, %v390_v46  ;;  %v167_v49 = vpop.xlane.xlu1 %166 }
 0x17b   :  { %v394_v50 = vsub.f32 %v141_v25, %v167_v49  ;;  %v164_v51 = vpop.xlane.xlu0 %163 }
 0x17c   :  { %299 = vpow2.f32 %v178_v48  ;;  %v396_v52 = vsub.f32 %v138_v27, %v164_v51 }
 0x17d   :  { %v292_v53 = vpop.eup %291  ;;  %301 = vpow2.f32 %v186_v47  ;;  %v190_v54 = vmul.f32 1.442695, %v394_v50 }
 0x17e   :  { %v188_v55 = vmul.f32 1.442695, %v396_v52  ;;  %v198_v56 = vsel %vm66_vm0, %v292_v53, 0.0  ;;  %v294_v57 = vpop.eup %293 }
 0x17f   :  { %199 = vadd.xlane.f32.xlu0 %v198_v56  ;;  %v192_v60 = vsel %vm66_vm0, %v294_v57, 0.0 }
 0x180   :  { %303 = vpow2.f32 %v188_v55 }
 0x181   :  { %v296_v58 = vpop.eup %295  ;;  %305 = vpow2.f32 %v190_v54 }
 0x182   :  { %v201_v59 = vsel %vm66_vm0, %v296_v58, 0.0  ;;  %v298_v61 = vpop.eup %297 }
 0x183   :  { %202 = vadd.xlane.f32.xlu1 %v201_v59  ;;  %193 = vadd.xlane.f32.xlu0 %v192_v60  ;;  %v204_v63 = vsel %vm66_vm0, %v298_v61, 0.0 }
 0x186   :  { %v300_v62 = vpop.eup %299 }
 0x187   :  { %205 = vadd.xlane.f32.xlu0 %v204_v63  ;;  %v195_v0 = vsel %vm66_vm0, %v300_v62, 0.0  ;;  %v302_v1 = vpop.eup %301 }
 0x188   :  { %196 = vadd.xlane.f32.xlu1 %v195_v0  ;;  %v207_v3 = vsel %vm66_vm0, %v302_v1, 0.0 }
 0x18a   :  { %v304_v2 = vpop.eup %303 }
 0x18b   :  { %v210_v4 = vsel %vm66_vm0, %v304_v2, 0.0  ;;  %v306_v5 = vpop.eup %305 }
 0x18c   :  { %208 = vadd.xlane.f32.xlu1 %v207_v3  ;;  %211 = vadd.xlane.f32.xlu0 %v210_v4  ;;  %v213_v6 = vsel %vm66_vm0, %v306_v5, 0.0 }
 0x190   :  { %214 = vadd.xlane.f32.xlu1 %v213_v6 }
 0x20c   :  { %v200_v7 = vpop.xlane.xlu0 %199 }
 0x20d   :  { %307 = vlog2.f32 %v200_v7 }
 0x210   :  { %v203_v8 = vpop.xlane.xlu1 %202  ;;  %v194_v9 = vpop.xlane.xlu0 %193 }
 0x211   :  { %309 = vlog2.f32 %v203_v8 }
 0x212   :  { %311 = vlog2.f32 %v194_v9 }
 0x214   :  { %v206_v10 = vpop.xlane.xlu0 %205 }
 0x215   :  { %313 = vlog2.f32 %v206_v10  ;;  %v197_v11 = vpop.xlane.xlu1 %196 }
 0x216   :  { %315 = vlog2.f32 %v197_v11 }
 0x217   :  { %v308_v12 = vpop.eup %307 }
 0x218   :  { %v221_v13 = vmul.f32 0.6931472, %v308_v12 }
 0x219   :  { %v209_v14 = vpop.xlane.xlu1 %208  ;;  %v212_v15 = vpop.xlane.xlu0 %211 }
 0x21a   :  { %v234_v16 = vsub.f32 %v376_v32, %v221_v13  ;;  %317 = vlog2.f32 %v209_v14 }
 0x21b   :  { %v310_v17 = vpop.eup %309  ;;  %319 = vlog2.f32 %v212_v15 }
 0x21c   :  { %v312_v18 = vpop.eup %311  ;;  %242 = vst.msk [vmem:[%s451_s3 + $0x10] sm:$0xff] %vm66_vm0, %v234_v16  ;;  %v223_v19 = vmul.f32 0.6931472, %v310_v17 }
 0x21d   :  { %v217_v20 = vmul.f32 0.6931472, %v312_v18  ;;  %v215_v21 = vpop.xlane.xlu1 %214 }
 0x21e   :  { %v235_v22 = vsub.f32 %v382_v38, %v223_v19  ;;  %321 = vlog2.f32 %v215_v21 }
 0x21f   :  { %v314_v23 = vpop.eup %313  ;;  %v232_v24 = vsub.f32 %v378_v34, %v217_v20 }
 0x220   :  { %v316_v25 = vpop.eup %315  ;;  %243 = vst.msk [vmem:[%s451_s3 + $0x18] sm:$0xff] %vm66_vm0, %v235_v22  ;;  %v225_v26 = vmul.f32 0.6931472, %v314_v23 }
 0x221   :  { %240 = vst.msk [vmem:[%s451_s3] sm:$0xff] %vm66_vm0, %v232_v24  ;;  %v219_v27 = vmul.f32 0.6931472, %v316_v25 }
 0x222   :  { %v236_v28 = vsub.f32 %v384_v40, %v225_v26 }
 0x223   :  { %v233_v29 = vsub.f32 %v390_v46, %v219_v27 }
 0x224   :  { %v318_v30 = vpop.eup %317  ;;  %244 = vst.msk [vmem:[%s451_s3 + $0x20] sm:$0xff] %vm66_vm0, %v236_v28 }
 0x225   :  { %v320_v31 = vpop.eup %319  ;;  %241 = vst.msk [vmem:[%s451_s3 + $0x8] sm:$0xff] %vm66_vm0, %v233_v29  ;;  %v227_v32 = vmul.f32 0.6931472, %v318_v30 }
 0x226   :  { %v229_v33 = vmul.f32 0.6931472, %v320_v31 }
 0x227   :  { %v237_v34 = vsub.f32 %v388_v44, %v227_v32 }
 0x228   :  { %v322_v35 = vpop.eup %321  ;;  %v238_v36 = vsub.f32 %v396_v52, %v229_v33 }
 0x229   :  { %245 = vst.msk [vmem:[%s451_s3 + $0x28] sm:$0xff] %vm66_vm0, %v237_v34  ;;  %v231_v37 = vmul.f32 0.6931472, %v322_v35 }
 0x22a   :  { %246 = vst.msk [vmem:[%s451_s3 + $0x30] sm:$0xff] %vm66_vm0, %v238_v36 }
 0x22b   :  { %v239_v38 = vsub.f32 %v394_v50, %v231_v37 }
 0x22d   :  { %247 = vst.msk [vmem:[%s451_s3 + $0x38] sm:$0xff] %vm66_vm0, %v239_v38 }

// kernel: lstm_model_forward.4
= control target key start
LH: loop header
LB: loop body
LE: loop exit
PB: predicated region body
PF: predicated region fallthrough
CT: control target
= control target key end

     0   :  { %vm19_vm0 = vcmask 261120   ;;  %v1020_v0 = vmov 0.0   ;;  %vm1021_vm1 = vmmov 0   ;;  %s1022_s26 = smov 64   ;;  %s1023_s29 = smov 32   ;;  %vm127_vm2 = vcmask 257024   ;;  %s1380_s1 = inlined_call_operand.vmem [shape: bf16[32,128], index: 1, kind: input, shape index: {}]   ;;  %s1381_s3 = inlined_call_operand.vmem [shape: f32[8,32], index: 3, kind: output, shape index: {1}]   ;;  %s1382_s4 = inlined_call_operand.vmem [shape: f32[8,32], index: 4, kind: output, shape index: {2}]   ;;  %s1383_s0 = inlined_call_operand.vmem [shape: f32[8,8,128], index: 0, kind: input, shape index: {}]   ;;  %s1384_s2 = inlined_call_operand.vmem [shape: bf16[8,8,32], index: 2, kind: output, shape index: {0}]  }
   0x1   :  { %885 = vmatprep.subr.bf16.mxu0 %v1020_v0  ;;  %v1054_v1 = vld [vmem:[%s1380_s1] sm:$0xff]   ;;  %889 = vmatprep.mubr.msk.bf16.mxu0 %vm1021_vm1, %v1020_v0  ;;  %20 = vst.msk [vmem:[%s1381_s3] sm:$0xff] %vm19_vm0, %v1020_v0  ;;  %v1070_v2 = vld [vmem:[%s1380_s1 + $0x8] sm:$0xff]   ;;  %21 = vst.msk [vmem:[%s1382_s4] sm:$0xff] %vm19_vm0, %v1020_v0  ;;  %s1024_s30 = smov 96  }
   0x2   :  { %893 = vmatprep.subr.bf16.mxu1 %v1020_v0  ;;  %897 = vmatprep.mubr.msk.bf16.mxu1 %vm1021_vm1, %v1020_v0  ;;  %v24_v5 = vld [vmem:[%s1383_s0] sm:$0xff]  ;;  %v818_v31 = vld [vmem:[%s1383_s0 + $0x8] sm:$0xff]  ;;  %v823_v56 = vld [vmem:[%s1383_s0 + $0x10] sm:$0xff] }
   0x3   :  { %886 = vmatpush3.bf16.msra.mxu0 %v1054_v1  ;;  %894 = vmatpush3.bf16.msra.mxu1 %v1054_v1 }
   0x4   :  { %887 = vmatprep.subr.bf16.mxu0 %v1020_v0  ;;  %895 = vmatprep.subr.bf16.mxu1 %v1020_v0 }
   0x7   :  { %888 = vmatpush3.bf16.msra.mxu0 %v1070_v2  ;;  %896 = vmatpush3.bf16.msra.mxu1 %v1070_v2 }
   0x8   :  { %v22_v3 = vld [vmem:[%s1381_s3] sm:$0xff]  ;;  %901 = vmatprep.subr.bf16.mxu0 %v1020_v0  ;;  %909 = vmatprep.subr.bf16.mxu1 %v1020_v0 }
   0x9   :  { %v25_v4 = vpack.c.bf16 %v22_v3, %v22_v3  ;;  %v23_v12 = vld [vmem:[%s1382_s4] sm:$0xff] }
   0xb   :  { %890 = vmatmul.mubr.msk.bf16.vlgmr.msra.gmra.mrb[0].mxu0 %vm19_vm0, %v25_v4 }
   0xc   :  { %902 = vmatpush3.bf16.msra.mxu0 %v1054_v1  ;;  %905 = vmatprep.mubr.msk.bf16.mxu0 %vm1021_vm1, %v1020_v0 }
   0xd   :  { %903 = vmatprep.subr.bf16.mxu0 %v1020_v0 }
  0x10   :  { %904 = vmatpush3.bf16.msra.mxu0 %v1070_v2 }
  0x11   :  { %917 = vmatprep.subr.bf16.mxu0 %v1020_v0 }
  0xde   :  { %v75_v6 = vpop.f32.mrb[0].mxu0 }
  0xdf   :  { %v81_v7 = vadd.f32 %v75_v6, %v24_v5  ;;  %v891_v8 = vpop.f32.mrb[1].mxu0 }
  0xe0   :  { %v78_v9 = vpop.f32.mrb[2].mxu0 }
  0xe1   :  { %956 = vtanh.f32 %v81_v7  ;;  %v892_v10 = vpop.f32.mrb[3].mxu0  ;;  %v816_v13 = vmul.f32 -1.442695, %v81_v7 }
  0xe3   :  { %958 = vpow2.f32 %v816_v13 }
  0xeb   :  { %v957_v11 = vpop.eup %956 }
  0xec   :  { %95 = vrot.lane.b32.xlu0 %v957_v11, %s1022_s26 }
  0xed   :  { %v959_v14 = vpop.eup %958 }
  0xee   :  { %v85_v15 = vadd.f32 1.0, %v959_v14 }
  0xf0   :  { %90 = vrot.lane.b32.xlu0 %v23_v12, %s1023_s29  ;;  %960 = vrcp.f32 %v85_v15 }
  0xfa   :  { %v961_v16 = vpop.eup %960 }
 0x15e   :  { %v96_v17 = vpop.permute.xlu0 %95 }
 0x15f   :  { %v98_v18 = vmul.f32 %v961_v16, %v96_v17 }
 0x161   :  { %100 = vrot.lane.b32.xlu1 %v98_v18, %s1023_s29 }
 0x162   :  { %v91_v19 = vpop.permute.xlu0 %90 }
 0x163   :  { %v93_v20 = vmul.f32 %v961_v16, %v91_v19 }
 0x1d3   :  { %v101_v21 = vpop.permute.xlu1 %100 }
 0x1d4   :  { %v103_v22 = vadd.f32 %v101_v21, %v93_v20  ;;  %v828_v20 = vld [vmem:[%s1383_s0 + $0x18] sm:$0xff] }
 0x1d6   :  { %962 = vtanh.f32 %v103_v22 }
 0x1e0   :  { %v963_v23 = vpop.eup %962 }
 0x1e1   :  { %106 = vrot.lane.b32.xlu1 %v963_v23, %s1022_s26 }
 0x1e5   :  { %111 = vrot.lane.b32.xlu1 %v103_v22, %s1024_s30 }
 0x253   :  { %v107_v24 = vpop.permute.xlu1 %106 }
 0x254   :  { %v1105_v25 = vmul.f32 %v961_v16, %v107_v24 }
 0x256   :  { %116 = vrot.lane.b32.xlu0 %v1105_v25, %s1023_s29 }
 0x257   :  { %v112_v26 = vpop.permute.xlu1 %111 }
 0x258   :  { %114 = vst.msk [vmem:[%s1382_s4] sm:$0xff] %vm19_vm0, %v112_v26 }
 0x25f   :  { %v130_v27 = vld [vmem:[%s1382_s4] sm:$0xff] }
 0x260   :  { %186 = vrot.lane.b32.xlu1 %v130_v27, %s1023_s29 }
 0x2c8   :  { %v117_v28 = vpop.permute.xlu0 %116 }
 0x2c9   :  { %119 = vst.msk [vmem:[%s1381_s3] sm:$0xff] %vm19_vm0, %v117_v28 }
 0x2d0   :  { %v129_v29 = vld [vmem:[%s1381_s3] sm:$0xff] }
 0x2d1   :  { %v133_v30 = vpack.c.bf16 %v129_v29, %v129_v29 }
 0x2d2   :  { %v187_v44 = vpop.permute.xlu1 %186 }
 0x2d3   :  { %898 = vmatmul.mubr.msk.bf16.vlgmr.msra.gmra.mrb[0].mxu1 %vm19_vm0, %v133_v30 }
 0x2d4   :  { %910 = vmatpush3.bf16.msra.mxu1 %v1054_v1  ;;  %913 = vmatprep.mubr.msk.bf16.mxu1 %vm1021_vm1, %v1020_v0 }
 0x2d5   :  { %911 = vmatprep.subr.bf16.mxu1 %v1020_v0 }
 0x2d8   :  { %912 = vmatpush3.bf16.msra.mxu1 %v1070_v2 }
 0x2d9   :  { %925 = vmatprep.subr.bf16.mxu1 %v1020_v0 }
 0x3a6   :  { %v171_v32 = vpop.f32.mrb[0].mxu1 }
 0x3a7   :  { %v177_v33 = vadd.f32 %v818_v31, %v171_v32  ;;  %v899_v34 = vpop.f32.mrb[1].mxu1 }
 0x3a8   :  { %v174_v35 = vpop.f32.mrb[2].mxu1 }
 0x3a9   :  { %964 = vtanh.f32 %v177_v33  ;;  %v900_v36 = vpop.f32.mrb[3].mxu1  ;;  %v820_v38 = vmul.f32 -1.442695, %v177_v33 }
 0x3ab   :  { %966 = vpow2.f32 %v820_v38 }
 0x3b3   :  { %v965_v37 = vpop.eup %964 }
 0x3b4   :  { %191 = vrot.lane.b32.xlu0 %v965_v37, %s1022_s26 }
 0x3b5   :  { %v967_v39 = vpop.eup %966 }
 0x3b6   :  { %v181_v40 = vadd.f32 1.0, %v967_v39 }
 0x3b8   :  { %968 = vrcp.f32 %v181_v40 }
 0x3c2   :  { %v969_v41 = vpop.eup %968 }
 0x3c3   :  { %v189_v45 = vmul.f32 %v969_v41, %v187_v44 }
 0x426   :  { %v192_v42 = vpop.permute.xlu0 %191 }
 0x427   :  { %v194_v43 = vmul.f32 %v969_v41, %v192_v42 }
 0x429   :  { %196 = vrot.lane.b32.xlu0 %v194_v43, %s1023_s29 }
 0x49b   :  { %v197_v46 = vpop.permute.xlu0 %196 }
 0x49c   :  { %v199_v47 = vadd.f32 %v197_v46, %v189_v45  ;;  %v833_v46 = vld [vmem:[%s1383_s0 + $0x20] sm:$0xff] }
 0x49e   :  { %970 = vtanh.f32 %v199_v47 }
 0x4a8   :  { %v971_v48 = vpop.eup %970 }
 0x4a9   :  { %202 = vrot.lane.b32.xlu1 %v971_v48, %s1022_s26 }
 0x4ad   :  { %207 = vrot.lane.b32.xlu1 %v199_v47, %s1024_s30 }
 0x51b   :  { %v203_v49 = vpop.permute.xlu1 %202 }
 0x51c   :  { %v1138_v50 = vmul.f32 %v969_v41, %v203_v49 }
 0x51e   :  { %212 = vrot.lane.b32.xlu0 %v1138_v50, %s1023_s29 }
 0x51f   :  { %v208_v51 = vpop.permute.xlu1 %207 }
 0x520   :  { %210 = vst.msk [vmem:[%s1382_s4] sm:$0xff] %vm19_vm0, %v208_v51 }
 0x527   :  { %v226_v52 = vld [vmem:[%s1382_s4] sm:$0xff] }
 0x528   :  { %282 = vrot.lane.b32.xlu1 %v226_v52, %s1023_s29 }
 0x590   :  { %v213_v53 = vpop.permute.xlu0 %212 }
 0x591   :  { %215 = vst.msk [vmem:[%s1381_s3] sm:$0xff] %vm19_vm0, %v213_v53 }
 0x598   :  { %v225_v54 = vld [vmem:[%s1381_s3] sm:$0xff] }
 0x599   :  { %v229_v55 = vpack.c.bf16 %v225_v54, %v225_v54 }
 0x59a   :  { %v283_v8 = vpop.permute.xlu1 %282 }
 0x59b   :  { %906 = vmatmul.mubr.msk.bf16.vlgmr.msra.gmra.mrb[4].mxu0 %vm19_vm0, %v229_v55 }
 0x59c   :  { %918 = vmatpush3.bf16.msra.mxu0 %v1054_v1  ;;  %921 = vmatprep.mubr.msk.bf16.mxu0 %vm1021_vm1, %v1020_v0 }
 0x59d   :  { %919 = vmatprep.subr.bf16.mxu0 %v1020_v0 }
 0x5a0   :  { %920 = vmatpush3.bf16.msra.mxu0 %v1070_v2 }
 0x5a1   :  { %933 = vmatprep.subr.bf16.mxu0 %v1020_v0 }
 0x66e   :  { %v267_v57 = vpop.f32.mrb[4].mxu0 }
 0x66f   :  { %v273_v58 = vadd.f32 %v823_v56, %v267_v57  ;;  %v907_v59 = vpop.f32.mrb[5].mxu0 }
 0x670   :  { %v270_v60 = vpop.f32.mrb[6].mxu0 }
 0x671   :  { %972 = vtanh.f32 %v273_v58  ;;  %v908_v61 = vpop.f32.mrb[7].mxu0  ;;  %v825_v63 = vmul.f32 -1.442695, %v273_v58 }
 0x673   :  { %974 = vpow2.f32 %v825_v63 }
 0x67b   :  { %v973_v62 = vpop.eup %972 }
 0x67c   :  { %287 = vrot.lane.b32.xlu0 %v973_v62, %s1022_s26 }
 0x67d   :  { %v975_v3 = vpop.eup %974 }
 0x67e   :  { %v277_v4 = vadd.f32 1.0, %v975_v3 }
 0x680   :  { %976 = vrcp.f32 %v277_v4 }
 0x68a   :  { %v977_v5 = vpop.eup %976 }
 0x68b   :  { %v285_v9 = vmul.f32 %v977_v5, %v283_v8 }
 0x6ee   :  { %v288_v6 = vpop.permute.xlu0 %287 }
 0x6ef   :  { %v290_v7 = vmul.f32 %v977_v5, %v288_v6 }
 0x6f1   :  { %292 = vrot.lane.b32.xlu0 %v290_v7, %s1023_s29 }
 0x763   :  { %v293_v10 = vpop.permute.xlu0 %292 }
 0x764   :  { %v295_v11 = vadd.f32 %v293_v10, %v285_v9 }
 0x766   :  { %978 = vtanh.f32 %v295_v11 }
 0x770   :  { %v979_v12 = vpop.eup %978 }
 0x771   :  { %298 = vrot.lane.b32.xlu1 %v979_v12, %s1022_s26 }
 0x775   :  { %303 = vrot.lane.b32.xlu1 %v295_v11, %s1024_s30  ;;  %v838_v11 = vld [vmem:[%s1383_s0 + $0x28] sm:$0xff] }
 0x7e3   :  { %v299_v13 = vpop.permute.xlu1 %298 }
 0x7e4   :  { %v1171_v14 = vmul.f32 %v977_v5, %v299_v13 }
 0x7e6   :  { %308 = vrot.lane.b32.xlu0 %v1171_v14, %s1023_s29 }
 0x7e7   :  { %v304_v15 = vpop.permute.xlu1 %303 }
 0x7e8   :  { %306 = vst.msk [vmem:[%s1382_s4] sm:$0xff] %vm19_vm0, %v304_v15 }
 0x7ef   :  { %v322_v16 = vld [vmem:[%s1382_s4] sm:$0xff] }
 0x7f0   :  { %378 = vrot.lane.b32.xlu1 %v322_v16, %s1023_s29 }
 0x858   :  { %v309_v17 = vpop.permute.xlu0 %308 }
 0x859   :  { %311 = vst.msk [vmem:[%s1381_s3] sm:$0xff] %vm19_vm0, %v309_v17 }
 0x860   :  { %v321_v18 = vld [vmem:[%s1381_s3] sm:$0xff] }
 0x861   :  { %v325_v19 = vpack.c.bf16 %v321_v18, %v321_v18 }
 0x862   :  { %v379_v34 = vpop.permute.xlu1 %378 }
 0x863   :  { %914 = vmatmul.mubr.msk.bf16.vlgmr.msra.gmra.mrb[4].mxu1 %vm19_vm0, %v325_v19 }
 0x864   :  { %926 = vmatpush3.bf16.msra.mxu1 %v1054_v1  ;;  %929 = vmatprep.mubr.msk.bf16.mxu1 %vm1021_vm1, %v1020_v0 }
 0x865   :  { %927 = vmatprep.subr.bf16.mxu1 %v1020_v0 }
 0x868   :  { %928 = vmatpush3.bf16.msra.mxu1 %v1070_v2 }
 0x869   :  { %941 = vmatprep.subr.bf16.mxu1 %v1020_v0 }
 0x936   :  { %v363_v21 = vpop.f32.mrb[4].mxu1 }
 0x937   :  { %v369_v22 = vadd.f32 %v828_v20, %v363_v21  ;;  %v915_v23 = vpop.f32.mrb[5].mxu1 }
 0x938   :  { %v366_v24 = vpop.f32.mrb[6].mxu1 }
 0x939   :  { %980 = vtanh.f32 %v369_v22  ;;  %v916_v26 = vpop.f32.mrb[7].mxu1  ;;  %v830_v28 = vmul.f32 -1.442695, %v369_v22 }
 0x93b   :  { %982 = vpow2.f32 %v830_v28 }
 0x943   :  { %v981_v27 = vpop.eup %980 }
 0x944   :  { %383 = vrot.lane.b32.xlu0 %v981_v27, %s1022_s26 }
 0x945   :  { %v983_v29 = vpop.eup %982 }
 0x946   :  { %v373_v30 = vadd.f32 1.0, %v983_v29 }
 0x948   :  { %984 = vrcp.f32 %v373_v30 }
 0x952   :  { %v985_v31 = vpop.eup %984 }
 0x953   :  { %v381_v35 = vmul.f32 %v985_v31, %v379_v34 }
 0x9b6   :  { %v384_v32 = vpop.permute.xlu0 %383 }
 0x9b7   :  { %v386_v33 = vmul.f32 %v985_v31, %v384_v32 }
 0x9b9   :  { %388 = vrot.lane.b32.xlu0 %v386_v33, %s1023_s29 }
 0xa2b   :  { %v389_v36 = vpop.permute.xlu0 %388 }
 0xa2c   :  { %v391_v37 = vadd.f32 %v389_v36, %v381_v35  ;;  %v843_v35 = vld [vmem:[%s1383_s0 + $0x30] sm:$0xff] }
 0xa2e   :  { %986 = vtanh.f32 %v391_v37 }
 0xa38   :  { %v987_v38 = vpop.eup %986 }
 0xa39   :  { %394 = vrot.lane.b32.xlu1 %v987_v38, %s1022_s26 }
 0xa3d   :  { %399 = vrot.lane.b32.xlu1 %v391_v37, %s1024_s30 }
 0xaab   :  { %v395_v39 = vpop.permute.xlu1 %394 }
 0xaac   :  { %v1204_v40 = vmul.f32 %v985_v31, %v395_v39 }
 0xaae   :  { %404 = vrot.lane.b32.xlu0 %v1204_v40, %s1023_s29 }
 0xaaf   :  { %v400_v41 = vpop.permute.xlu1 %399 }
 0xab0   :  { %402 = vst.msk [vmem:[%s1382_s4] sm:$0xff] %vm19_vm0, %v400_v41 }
 0xab7   :  { %v418_v42 = vld [vmem:[%s1382_s4] sm:$0xff] }
 0xab8   :  { %474 = vrot.lane.b32.xlu1 %v418_v42, %s1023_s29 }
 0xb20   :  { %v405_v43 = vpop.permute.xlu0 %404 }
 0xb21   :  { %407 = vst.msk [vmem:[%s1381_s3] sm:$0xff] %vm19_vm0, %v405_v43 }
 0xb28   :  { %v417_v44 = vld [vmem:[%s1381_s3] sm:$0xff] }
 0xb29   :  { %v421_v45 = vpack.c.bf16 %v417_v44, %v417_v44 }
 0xb2a   :  { %v475_v60 = vpop.permute.xlu1 %474 }
 0xb2b   :  { %922 = vmatmul.mubr.msk.bf16.vlgmr.msra.gmra.mrb[8].mxu0 %vm19_vm0, %v421_v45 }
 0xb2c   :  { %934 = vmatpush3.bf16.msra.mxu0 %v1054_v1  ;;  %937 = vmatprep.mubr.msk.bf16.mxu0 %vm1021_vm1, %v1020_v0 }
 0xb2d   :  { %935 = vmatprep.subr.bf16.mxu0 %v1020_v0 }
 0xb30   :  { %936 = vmatpush3.bf16.msra.mxu0 %v1070_v2 }
 0xbfe   :  { %v459_v47 = vpop.f32.mrb[8].mxu0 }
 0xbff   :  { %v465_v48 = vadd.f32 %v833_v46, %v459_v47  ;;  %v923_v49 = vpop.f32.mrb[9].mxu0 }
 0xc00   :  { %v462_v51 = vpop.f32.mrb[10].mxu0 }
 0xc01   :  { %988 = vtanh.f32 %v465_v48  ;;  %v924_v52 = vpop.f32.mrb[11].mxu0  ;;  %v835_v54 = vmul.f32 -1.442695, %v465_v48 }
 0xc03   :  { %990 = vpow2.f32 %v835_v54 }
 0xc0b   :  { %v989_v53 = vpop.eup %988 }
 0xc0c   :  { %479 = vrot.lane.b32.xlu0 %v989_v53, %s1022_s26 }
 0xc0d   :  { %v991_v55 = vpop.eup %990 }
 0xc0e   :  { %v469_v56 = vadd.f32 1.0, %v991_v55 }
 0xc10   :  { %992 = vrcp.f32 %v469_v56 }
 0xc1a   :  { %v993_v57 = vpop.eup %992 }
 0xc1b   :  { %v477_v61 = vmul.f32 %v993_v57, %v475_v60 }
 0xc7e   :  { %v480_v58 = vpop.permute.xlu0 %479 }
 0xc7f   :  { %v482_v59 = vmul.f32 %v993_v57, %v480_v58 }
 0xc81   :  { %484 = vrot.lane.b32.xlu0 %v482_v59, %s1023_s29 }
 0xcf3   :  { %v485_v62 = vpop.permute.xlu0 %484 }
 0xcf4   :  { %v487_v63 = vadd.f32 %v485_v62, %v477_v61  ;;  %v848_v62 = vld [vmem:[%s1383_s0 + $0x38] sm:$0xff] }
 0xcf6   :  { %994 = vtanh.f32 %v487_v63 }
 0xd00   :  { %v995_v3 = vpop.eup %994 }
 0xd01   :  { %490 = vrot.lane.b32.xlu1 %v995_v3, %s1022_s26 }
 0xd05   :  { %495 = vrot.lane.b32.xlu1 %v487_v63, %s1024_s30 }
 0xd73   :  { %v491_v4 = vpop.permute.xlu1 %490 }
 0xd74   :  { %v1236_v5 = vmul.f32 %v993_v57, %v491_v4 }
 0xd76   :  { %500 = vrot.lane.b32.xlu0 %v1236_v5, %s1023_s29 }
 0xd77   :  { %v496_v6 = vpop.permute.xlu1 %495 }
 0xd78   :  { %498 = vst.msk [vmem:[%s1382_s4] sm:$0xff] %vm19_vm0, %v496_v6 }
 0xd7f   :  { %v514_v7 = vld [vmem:[%s1382_s4] sm:$0xff] }
 0xd80   :  { %570 = vrot.lane.b32.xlu1 %v514_v7, %s1023_s29 }
 0xde8   :  { %v501_v8 = vpop.permute.xlu0 %500 }
 0xde9   :  { %503 = vst.msk [vmem:[%s1381_s3] sm:$0xff] %vm19_vm0, %v501_v8 }
 0xdf0   :  { %v513_v9 = vld [vmem:[%s1381_s3] sm:$0xff] }
 0xdf1   :  { %v517_v10 = vpack.c.bf16 %v513_v9, %v513_v9 }
 0xdf2   :  { %v571_v22 = vpop.permute.xlu1 %570 }
 0xdf3   :  { %930 = vmatmul.mubr.msk.bf16.vlgmr.msra.gmra.mrb[8].mxu1 %vm19_vm0, %v517_v10 }
 0xdf4   :  { %942 = vmatpush3.bf16.msra.mxu1 %v1054_v1  ;;  %945 = vmatprep.mubr.msk.bf16.mxu1 %vm1021_vm1, %v1020_v0 }
 0xdf5   :  { %943 = vmatprep.subr.bf16.mxu1 %v1020_v0 }
 0xdf8   :  { %944 = vmatpush3.bf16.msra.mxu1 %v1070_v2 }
 0xec6   :  { %v555_v12 = vpop.f32.mrb[8].mxu1 }
 0xec7   :  { %v561_v13 = vadd.f32 %v838_v11, %v555_v12  ;;  %v931_v15 = vpop.f32.mrb[9].mxu1 }
 0xec8   :  { %v558_v16 = vpop.f32.mrb[10].mxu1 }
 0xec9   :  { %996 = vtanh.f32 %v561_v13  ;;  %v932_v17 = vpop.f32.mrb[11].mxu1  ;;  %v840_v1 = vmul.f32 -1.442695, %v561_v13  ;;  %v853_v16 = vpack.c.bf16 %v1105_v25, %v1105_v25 }
 0xeca   :  { %v855_v17 = vpack.c.bf16 %v1171_v14, %v1171_v14 }
 0xecb   :  { %998 = vpow2.f32 %v840_v1 }
 0xed3   :  { %v997_v18 = vpop.eup %996 }
 0xed4   :  { %575 = vrot.lane.b32.xlu0 %v997_v18, %s1022_s26  ;;  %v857_v18 = vpack.c.bf16 %v1236_v5, %v1236_v5 }
 0xed5   :  { %v999_v19 = vpop.eup %998 }
 0xed6   :  { %v565_v20 = vadd.f32 1.0, %v999_v19 }
 0xed8   :  { %1000 = vrcp.f32 %v565_v20 }
 0xee2   :  { %v1001_v0 = vpop.eup %1000 }
 0xee3   :  { %v573_v23 = vmul.f32 %v1001_v0, %v571_v22  ;;  %v854_v22 = vpack.c.bf16 %v1138_v50, %v1138_v50 }
 0xf46   :  { %v576_v2 = vpop.permute.xlu0 %575 }
 0xf47   :  { %v578_v21 = vmul.f32 %v1001_v0, %v576_v2 }
 0xf49   :  { %580 = vrot.lane.b32.xlu0 %v578_v21, %s1023_s29 }
 0xfbb   :  { %v581_v24 = vpop.permute.xlu0 %580 }
 0xfbc   :  { %v583_v26 = vadd.f32 %v581_v24, %v573_v23  ;;  %v856_v24 = vpack.c.bf16 %v1204_v40, %v1204_v40 }
 0xfbe   :  { %1002 = vtanh.f32 %v583_v26 }
 0xfc8   :  { %v1003_v27 = vpop.eup %1002 }
 0xfc9   :  { %586 = vrot.lane.b32.xlu1 %v1003_v27, %s1022_s26 }
 0xfcd   :  { %591 = vrot.lane.b32.xlu1 %v583_v26, %s1024_s30 }
0x103b   :  { %v587_v28 = vpop.permute.xlu1 %586 }
0x103c   :  { %v1268_v29 = vmul.f32 %v1001_v0, %v587_v28 }
0x103e   :  { %596 = vrot.lane.b32.xlu0 %v1268_v29, %s1023_s29  ;;  %v858_v26 = vpack.c.bf16 %v1268_v29, %v1268_v29 }
0x103f   :  { %v592_v30 = vpop.permute.xlu1 %591 }
0x1040   :  { %594 = vst.msk [vmem:[%s1382_s4] sm:$0xff] %vm19_vm0, %v592_v30 }
0x1047   :  { %v610_v31 = vld [vmem:[%s1382_s4] sm:$0xff] }
0x1048   :  { %666 = vrot.lane.b32.xlu1 %v610_v31, %s1023_s29 }
0x10b0   :  { %v597_v32 = vpop.permute.xlu0 %596 }
0x10b1   :  { %599 = vst.msk [vmem:[%s1381_s3] sm:$0xff] %vm19_vm0, %v597_v32 }
0x10b8   :  { %v609_v33 = vld [vmem:[%s1381_s3] sm:$0xff] }
0x10b9   :  { %v613_v34 = vpack.c.bf16 %v609_v33, %v609_v33 }
0x10ba   :  { %v667_v49 = vpop.permute.xlu1 %666 }
0x10bb   :  { %938 = vmatmul.mubr.msk.bf16.vlgmr.msra.gmra.mrb[12].mxu0 %vm19_vm0, %v613_v34 }
0x118e   :  { %v651_v36 = vpop.f32.mrb[12].mxu0 }
0x118f   :  { %v657_v37 = vadd.f32 %v843_v35, %v651_v36  ;;  %v939_v38 = vpop.f32.mrb[13].mxu0 }
0x1190   :  { %v654_v39 = vpop.f32.mrb[14].mxu0 }
0x1191   :  { %1004 = vtanh.f32 %v657_v37  ;;  %v940_v41 = vpop.f32.mrb[15].mxu0  ;;  %v845_v43 = vmul.f32 -1.442695, %v657_v37 }
0x1193   :  { %1006 = vpow2.f32 %v845_v43 }
0x119b   :  { %v1005_v42 = vpop.eup %1004 }
0x119c   :  { %671 = vrot.lane.b32.xlu0 %v1005_v42, %s1022_s26 }
0x119d   :  { %v1007_v44 = vpop.eup %1006 }
0x119e   :  { %v661_v45 = vadd.f32 1.0, %v1007_v44 }
0x11a0   :  { %1008 = vrcp.f32 %v661_v45 }
0x11aa   :  { %v1009_v46 = vpop.eup %1008 }
0x11ab   :  { %v669_v51 = vmul.f32 %v1009_v46, %v667_v49 }
0x120e   :  { %v672_v47 = vpop.permute.xlu0 %671 }
0x120f   :  { %v674_v48 = vmul.f32 %v1009_v46, %v672_v47 }
0x1211   :  { %676 = vrot.lane.b32.xlu0 %v674_v48, %s1023_s29 }
0x1283   :  { %v677_v52 = vpop.permute.xlu0 %676 }
0x1284   :  { %v679_v53 = vadd.f32 %v677_v52, %v669_v51 }
0x1286   :  { %1010 = vtanh.f32 %v679_v53 }
0x1290   :  { %v1011_v54 = vpop.eup %1010 }
0x1291   :  { %682 = vrot.lane.b32.xlu1 %v1011_v54, %s1022_s26 }
0x1295   :  { %687 = vrot.lane.b32.xlu1 %v679_v53, %s1024_s30 }
0x1303   :  { %v683_v55 = vpop.permute.xlu1 %682 }
0x1304   :  { %v685_v56 = vmul.f32 %v1009_v46, %v683_v55 }
0x1306   :  { %692 = vrot.lane.b32.xlu0 %v685_v56, %s1023_s29  ;;  %v859_v1 = vpack.c.bf16 %v685_v56, %v685_v56 }
0x1307   :  { %v688_v57 = vpop.permute.xlu1 %687 }
0x1308   :  { %690 = vst.msk [vmem:[%s1382_s4] sm:$0xff] %vm19_vm0, %v688_v57 }
0x130f   :  { %v706_v58 = vld [vmem:[%s1382_s4] sm:$0xff] }
0x1310   :  { %762 = vrot.lane.b32.xlu1 %v706_v58, %s1023_s29 }
0x1378   :  { %v693_v59 = vpop.permute.xlu0 %692 }
0x1379   :  { %695 = vst.msk [vmem:[%s1381_s3] sm:$0xff] %vm19_vm0, %v693_v59 }
0x1380   :  { %v705_v60 = vld [vmem:[%s1381_s3] sm:$0xff] }
0x1381   :  { %v709_v61 = vpack.c.bf16 %v705_v60, %v705_v60 }
0x1382   :  { %v763_v19 = vpop.permute.xlu1 %762 }
0x1383   :  { %946 = vmatmul.mubr.msk.bf16.vlgmr.msra.gmra.mrb[12].mxu1 %vm19_vm0, %v709_v61 }
0x1456   :  { %v747_v63 = vpop.f32.mrb[12].mxu1 }
0x1457   :  { %v753_v3 = vadd.f32 %v848_v62, %v747_v63  ;;  %v947_v4 = vpop.f32.mrb[13].mxu1 }
0x1458   :  { %v750_v6 = vpop.f32.mrb[14].mxu1 }
0x1459   :  { %1012 = vtanh.f32 %v753_v3  ;;  %v948_v7 = vpop.f32.mrb[15].mxu1  ;;  %v850_v9 = vmul.f32 -1.442695, %v753_v3 }
0x145b   :  { %1014 = vpow2.f32 %v850_v9 }
0x1463   :  { %v1013_v8 = vpop.eup %1012 }
0x1464   :  { %767 = vrot.lane.b32.xlu0 %v1013_v8, %s1022_s26 }
0x1465   :  { %v1015_v10 = vpop.eup %1014 }
0x1466   :  { %v757_v11 = vadd.f32 1.0, %v1015_v10 }
0x1468   :  { %1016 = vrcp.f32 %v757_v11 }
0x1472   :  { %v1017_v12 = vpop.eup %1016 }
0x1473   :  { %v765_v20 = vmul.f32 %v1017_v12, %v763_v19 }
0x14d6   :  { %v768_v13 = vpop.permute.xlu0 %767 }
0x14d7   :  { %v770_v15 = vmul.f32 %v1017_v12, %v768_v13 }
0x14d9   :  { %772 = vrot.lane.b32.xlu0 %v770_v15, %s1023_s29 }
0x14dd   :  { %124 = vrot.lane.b32.xlu0 %v853_v16, %s1023_s29 }
0x14e1   :  { %316 = vrot.lane.b32.xlu0 %v855_v17, %s1023_s29 }
0x14e5   :  { %508 = vrot.lane.b32.xlu0 %v857_v18, %s1023_s29 }
0x14e9   :  { %700 = vrot.lane.b32.xlu0 %v859_v1, %s1023_s29 }
0x154b   :  { %v773_v0 = vpop.permute.xlu0 %772 }
0x154c   :  { %v775_v2 = vadd.f32 %v773_v0, %v765_v20 }
0x154e   :  { %1018 = vtanh.f32 %v775_v2 }
0x154f   :  { %v125_v25 = vpop.permute.xlu0 %124 }
0x1550   :  { %128 = vst.msk [vmem:[%s1384_s2] sm:$0xf] %vm127_vm2, %v125_v25 }
0x1553   :  { %v317_v14 = vpop.permute.xlu0 %316 }
0x1554   :  { %827 = vst.msk [vmem:[%s1384_s2 + $0x8] sm:$0xf] %vm127_vm2, %v317_v14 }
0x1557   :  { %v509_v5 = vpop.permute.xlu0 %508 }
0x1558   :  { %v1019_v21 = vpop.eup %1018  ;;  %837 = vst.msk [vmem:[%s1384_s2 + $0x10] sm:$0xf] %vm127_vm2, %v509_v5 }
0x1559   :  { %778 = vrot.lane.b32.xlu1 %v1019_v21, %s1022_s26 }
0x155b   :  { %v701_v23 = vpop.permute.xlu0 %700 }
0x155c   :  { %847 = vst.msk [vmem:[%s1384_s2 + $0x18] sm:$0xf] %vm127_vm2, %v701_v23 }
0x155d   :  { %220 = vrot.lane.b32.xlu1 %v854_v22, %s1023_s29 }
0x1561   :  { %412 = vrot.lane.b32.xlu1 %v856_v24, %s1023_s29 }
0x1565   :  { %604 = vrot.lane.b32.xlu1 %v858_v26, %s1023_s29 }
0x1569   :  { %783 = vrot.lane.b32.xlu1 %v775_v2, %s1024_s30 }
0x15cb   :  { %v779_v50 = vpop.permute.xlu1 %778 }
0x15cc   :  { %v781_v27 = vmul.f32 %v1017_v12, %v779_v50 }
0x15ce   :  { %v860_v28 = vpack.c.bf16 %v781_v27, %v781_v27  ;;  %788 = vrot.lane.b32.xlu0 %v781_v27, %s1023_s29 }
0x15cf   :  { %v221_v30 = vpop.permute.xlu1 %220 }
0x15d0   :  { %822 = vst.msk [vmem:[%s1384_s2 + $0x4] sm:$0xf] %vm127_vm2, %v221_v30  ;;  %796 = vrot.lane.b32.xlu1 %v860_v28, %s1023_s29 }
0x15d3   :  { %v413_v40 = vpop.permute.xlu1 %412 }
0x15d4   :  { %832 = vst.msk [vmem:[%s1384_s2 + $0xc] sm:$0xf] %vm127_vm2, %v413_v40 }
0x15d7   :  { %v605_v29 = vpop.permute.xlu1 %604 }
0x15d8   :  { %842 = vst.msk [vmem:[%s1384_s2 + $0x14] sm:$0xf] %vm127_vm2, %v605_v29 }
0x15db   :  { %v784_v31 = vpop.permute.xlu1 %783 }
0x15dc   :  { %786 = vst.msk [vmem:[%s1382_s4] sm:$0xff] %vm19_vm0, %v784_v31 }
0x1640   :  { %v789_v32 = vpop.permute.xlu0 %788 }
0x1641   :  { %791 = vst.msk [vmem:[%s1381_s3] sm:$0xff] %vm19_vm0, %v789_v32 }
0x1642   :  { %v797_v33 = vpop.permute.xlu1 %796 }
0x1643   :  { %852 = vst.msk [vmem:[%s1384_s2 + $0x1c] sm:$0xf] %vm127_vm2, %v797_v33 }

</bundles_post_ra>
